<compile_context>
chip_gen: v5e
topology: v5e:2x2
jax: 0.10.0
libtpu: 0.0.40
codegen_flags: <defaults>
</compile_context>

<pallas_src>
import functools

import jax
import jax.numpy as jnp
from jax.experimental import pallas as pl
from jax.experimental.pallas import tpu as pltpu

_EPS = 1e-5


def _basic_block_kernel(x_ref, w1_ref, w2_ref, gb_ref, mask_ref, o_ref, *,
                        src, out, margin, xpad, row, n_valid1, n_valid2):
    """Fused conv3x3+BN+ReLU -> maxpool2x2 -> conv3x3+BN+ReLU.

    x_ref   : (4, Cin, SRC_IN) quad-major zero-padded input slab
              (quad = (h%2)*2 + (w%2); lane = XPAD+MARGIN+n*IMG_STRIDE
               + (hi+1)*ROW + (wi+1))
    w1_ref  : (Cout, 9*Cin)   conv1 weights, tap-major / cin-minor rows
    w2_ref  : (Cout, 9*Cout)  conv2 weights, tap-major / cin-minor rows
    gb_ref  : (Cout, 4)       columns = [gamma1, beta1, gamma2, beta2]
    mask_ref: (1, SRC)        1.0 on valid pooled-grid lanes, 0.0 elsewhere
    o_ref   : (Cout, OUT)     lane-dense output slab (valid lanes sliced
                              out by the wrapper with reshape/slice)
    """
    f32 = jnp.float32
    lo = jax.lax.Precision.DEFAULT          # single bf16 MXU pass, f32 accum

    g1 = gb_ref[:, 0:1]
    b1 = gb_ref[:, 1:2]
    g2 = gb_ref[:, 2:3]
    b2 = gb_ref[:, 3:4]
    m = mask_ref[...]                        # (1, src)
    w1 = w1_ref[...]                         # (Cout, 9*Cin)
    cout = o_ref.shape[0]

    xq = [x_ref[q] for q in range(4)]        # 4 x (Cin, SRC_IN)
    taps = [(kh - 1, kw - 1) for kh in range(3) for kw in range(3)]

    # ---- conv1: one MXU dot per output quad over in-register stacked taps --
    y1 = []
    for hb in range(2):
        for wb in range(2):
            slabs = []
            for dh, dw in taps:
                q_in = ((hb + dh) % 2) * 2 + ((wb + dw) % 2)
                start = xpad + ((hb + dh) // 2) * row + ((wb + dw) // 2)
                slabs.append(xq[q_in][:, start:start + src])       # (Cin, src)
            op = jnp.concatenate(slabs, axis=0)                    # (9*Cin, src)
            y1.append(jnp.dot(w1, op, preferred_element_type=f32,
                              precision=lo))                       # (Cout, src)

    # ---- BN1 (training-mode batch stats over N*H*W positions), one pass ----
    mb = jnp.broadcast_to(m, (cout, src))    # hoisted: JAX does not CSE bcasts
    inv_n1 = 1.0 / float(n_valid1)
    s1 = jnp.zeros((cout, 1), f32)
    q1 = jnp.zeros((cout, 1), f32)
    for y in y1:
        z = y * mb                           # zero out garbage/halo lanes
        s1 = s1 + jnp.sum(z, axis=1, keepdims=True)
        q1 = q1 + jnp.sum(z * z, axis=1, keepdims=True)
    mean1 = s1 * inv_n1
    var1 = q1 * inv_n1 - mean1 * mean1
    scale1 = jax.lax.rsqrt(var1 + _EPS) * g1
    shift1 = b1 - mean1 * scale1

    # ---- BN1 + ReLU, then maxpool 2x2 = elementwise max over the 4 quads ---
    yn = [jnp.maximum(y * scale1 + shift1, 0.0) for y in y1]
    pooled = jnp.maximum(jnp.maximum(yn[0], yn[1]), jnp.maximum(yn[2], yn[3]))
    pooled = pooled * mb                     # re-establish zero ring for conv2

    # ---- conv2: ONE MXU dot over 9 sublane-stacked shifted halo slices -----
    slabs2 = [pooled[:, margin + dh * row + dw: margin + dh * row + dw + out]
              for dh in (-1, 0, 1) for dw in (-1, 0, 1)]
    op2 = jnp.concatenate(slabs2, axis=0)                          # (9*Cout, out)
    acc = jnp.dot(w2_ref[...], op2, preferred_element_type=f32,
                  precision=lo)                                    # (Cout, out)

    # ---- BN2 (masked stats over the valid output lanes) + ReLU -------------
    ov = m[:, margin:margin + out]
    z2 = acc * ov
    inv_n2 = 1.0 / float(n_valid2)
    mean2 = jnp.sum(z2, axis=1, keepdims=True) * inv_n2
    var2 = jnp.sum(z2 * z2, axis=1, keepdims=True) * inv_n2 - mean2 * mean2
    scale2 = jax.lax.rsqrt(var2 + _EPS) * g2
    # lanes outside the valid set hold junk; the wrapper never reads them
    o_ref[...] = jnp.maximum((acc - mean2) * scale2 + b2, 0.0)


def basic_block(x_nchw, params):
    """Forward pass of BasicBlock.  x_nchw: (N, Cin, H, W), params in PyTorch layout."""
    w1, g1, b1, w2, g2, b2 = params                     # w*: (Cout, Cin, 3, 3) OIHW
    N, Cin, H, W = x_nchw.shape
    Cout = w1.shape[0]
    assert H % 2 == 0 and W % 2 == 0
    Hp, Wp = H // 2, W // 2

    # ----- lane-layout constants (128-multiples for full-width vregs) -------
    ROW = Wp + 2                                        # padded pooled-grid row
    img_lanes = (Hp + 2) * ROW                          # padded pooled grid / image
    IMG_STRIDE = 128 * pl.cdiv(img_lanes, 128)          # per-image lane stride
    MARGIN = 64                                         # halo for conv2 lane slices
    XPAD = 64                                           # extra halo for conv1 slices
    assert ROW + 1 <= MARGIN and ROW + 1 <= XPAD
    OUT = N * IMG_STRIDE                                # conv2 output lane domain
    SRC = 2 * MARGIN + OUT                              # pooled "source" lane domain
    SRC_IN = SRC + 2 * XPAD                             # conv1 input lane domain

    # ----- wrapper-side layout plumbing: pads / reshapes / transposes only --
    x = x_nchw.astype(jnp.float32)
    # quad-major split: (N,Cin,Hp,2,Wp,2) -> (ha, wa, Cin, N, Hp, Wp)
    xq = x.reshape(N, Cin, Hp, 2, Wp, 2)
    xq = jnp.transpose(xq, (3, 5, 1, 0, 2, 4)).reshape(4, Cin, N, Hp, Wp)
    xq = jnp.pad(xq, ((0, 0), (0, 0), (0, 0), (1, 1), (1, 1)))     # zero ring
    xq = xq.reshape(4, Cin, N, img_lanes)
    xq = jnp.pad(xq, ((0, 0), (0, 0), (0, 0), (0, IMG_STRIDE - img_lanes)))
    xq = xq.reshape(4, Cin, OUT)
    x_in = jnp.pad(xq, ((0, 0), (0, 0), (XPAD + MARGIN, XPAD + MARGIN)))  # (4,Cin,SRC_IN)

    mk = jnp.ones((N, Hp, Wp), jnp.float32)
    mk = jnp.pad(mk, ((0, 0), (1, 1), (1, 1))).reshape(N, img_lanes)
    mk = jnp.pad(mk, ((0, 0), (0, IMG_STRIDE - img_lanes))).reshape(1, OUT)
    mask = jnp.pad(mk, ((0, 0), (MARGIN, MARGIN)))                 # (1, SRC)

    # tap-major, cin-minor weight rows (match the in-kernel sublane stacking)
    w1m = jnp.transpose(w1, (0, 2, 3, 1)).reshape(Cout, 9 * Cin).astype(jnp.float32)
    w2m = jnp.transpose(w2, (0, 2, 3, 1)).reshape(Cout, 9 * Cout).astype(jnp.float32)
    gb = jnp.stack([g1, b1, g2, b2], axis=1).astype(jnp.float32)   # (Cout, 4)

    kernel = functools.partial(
        _basic_block_kernel, src=SRC, out=OUT, margin=MARGIN, xpad=XPAD,
        row=ROW, n_valid1=N * H * W, n_valid2=N * Hp * Wp)

    o = pl.pallas_call(
        kernel,
        out_shape=jax.ShapeDtypeStruct((Cout, OUT), jnp.float32),
        grid=(1,),
        in_specs=[
            pl.BlockSpec(x_in.shape, lambda i: (0, 0, 0)),
            pl.BlockSpec(w1m.shape, lambda i: (0, 0)),
            pl.BlockSpec(w2m.shape, lambda i: (0, 0)),
            pl.BlockSpec(gb.shape, lambda i: (0, 0)),
            pl.BlockSpec(mask.shape, lambda i: (0, 0)),
        ],
        out_specs=pl.BlockSpec((Cout, OUT), lambda i: (0, 0)),
        compiler_params=pltpu.CompilerParams(dimension_semantics=("arbitrary",)),
    )(x_in, w1m, w2m, gb, mask)

    # un-flatten the lane-dense slab back to NCHW: reshape + slice only
    o = o.reshape(Cout, N, IMG_STRIDE)[:, :, :img_lanes]
    o = o.reshape(Cout, N, Hp + 2, ROW)[:, :, 1:Hp + 1, 1:Wp + 1]  # (Cout,N,Hp,Wp)
    return jnp.transpose(o, (1, 0, 2, 3))                          # (N,Cout,Hp,Wp)


# ---------------- pure-JAX reference (PyTorch semantics, NCHW, f32) ----------
def reference(x, w1, g1, b1, w2, g2, b2):
    def conv(xc, wc):
        return jax.lax.conv_general_dilated(
            xc, wc, window_strides=(1, 1), padding=((1, 1), (1, 1)),
            dimension_numbers=("NCHW", "OIHW", "NCHW"),
            precision=jax.lax.Precision.HIGHEST)

    def bn(xc, g, b):
        mean = jnp.mean(xc, axis=(0, 2, 3), keepdims=True)
        var = jnp.mean((xc - mean) ** 2, axis=(0, 2, 3), keepdims=True)
        return ((xc - mean) / jnp.sqrt(var + _EPS)
                * g.reshape(1, -1, 1, 1) + b.reshape(1, -1, 1, 1))

    y = jnp.maximum(bn(conv(x, w1), g1, b1), 0.0)
    N, C, H, W = y.shape
    y = y.reshape(N, C, H // 2, 2, W // 2, 2).max(axis=(3, 5))     # maxpool 2x2
    y = jnp.maximum(bn(conv(y, w2), g2, b2), 0.0)
    return y


if __name__ == "__main__":
    N, Cin, Cmid, H, W = 2, 4, 8, 16, 16                 # inplanes=4, planes=8

    key = jax.random.PRNGKey(0)
    k = jax.random.split(key, 7)
    x = jax.random.normal(k[0], (N, Cin, H, W), jnp.float32)
    w1 = 0.2 * jax.random.normal(k[1], (Cmid, Cin, 3, 3), jnp.float32)
    w2 = 0.2 * jax.random.normal(k[2], (Cmid, Cmid, 3, 3), jnp.float32)
    g1 = 1.0 + 0.1 * jax.random.normal(k[3], (Cmid,), jnp.float32)
    b1 = 0.1 * jax.random.normal(k[4], (Cmid,), jnp.float32)
    g2 = 1.0 + 0.1 * jax.random.normal(k[5], (Cmid,), jnp.float32)
    b2 = 0.1 * jax.random.normal(k[6], (Cmid,), jnp.float32)
    params = (w1, g1, b1, w2, g2, b2)

    out = jax.block_until_ready(basic_block(x, params))
    ref = jax.block_until_ready(reference(x, w1, g1, b1, w2, g2, b2))

    assert out.shape == (N, Cmid, H // 2, W // 2), out.shape
    err = float(jnp.max(jnp.abs(out - ref)))
    # DEFAULT-precision (bf16) MXU passes vs f32 HIGHEST reference: allow 2e-2.
    if err > 2e-2:
        raise AssertionError(f"kernel mismatch vs reference, max abs err = {err}")

    print("KERNEL_OK")
</pallas_src>

<mosaic_0001>
module attributes {stable_mosaic.version = 11 : i64} {
  func.func @_basic_block_kernel(%arg0: i32, %arg1: memref<4x4x512xf32, #tpu.memory_space<vmem>>, %arg2: memref<8x36xf32, #tpu.memory_space<vmem>>, %arg3: memref<8x72xf32, #tpu.memory_space<vmem>>, %arg4: memref<8x4xf32, #tpu.memory_space<vmem>>, %arg5: memref<1x384xf32, #tpu.memory_space<vmem>>, %arg6: memref<8x256xf32, #tpu.memory_space<vmem>>) attributes {dimension_semantics = [#tpu.dimension_semantics<arbitrary>], iteration_bounds = array<i64: 1>, scalar_prefetch = 0 : i64, scratch_operands = 0 : i64, tpu.core_type = #tpu.core_type<tc>, window_params = [{pipeline_mode = #tpu.pipeline_mode<synchronous>, transform_indices = @transform_0, window_bounds = array<i64: 4, 4, 512>}, {pipeline_mode = #tpu.pipeline_mode<synchronous>, transform_indices = @transform_1, window_bounds = array<i64: 8, 36>}, {pipeline_mode = #tpu.pipeline_mode<synchronous>, transform_indices = @transform_2, window_bounds = array<i64: 8, 72>}, {pipeline_mode = #tpu.pipeline_mode<synchronous>, transform_indices = @transform_3, window_bounds = array<i64: 8, 4>}, {pipeline_mode = #tpu.pipeline_mode<synchronous>, transform_indices = @transform_4, window_bounds = array<i64: 1, 384>}, {pipeline_mode = #tpu.pipeline_mode<synchronous>, transform_indices = @transform_5, window_bounds = array<i64: 8, 256>}]} {
    %c0 = arith.constant 0 : index
    %c0_0 = arith.constant 0 : index
    %0 = vector.load %arg4[%c0, %c0_0] : memref<8x4xf32, #tpu.memory_space<vmem>>, vector<8x1xf32>
    %c0_1 = arith.constant 0 : index
    %c1 = arith.constant 1 : index
    %1 = vector.load %arg4[%c0_1, %c1] : memref<8x4xf32, #tpu.memory_space<vmem>>, vector<8x1xf32>
    %c0_2 = arith.constant 0 : index
    %c2 = arith.constant 2 : index
    %2 = vector.load %arg4[%c0_2, %c2] : memref<8x4xf32, #tpu.memory_space<vmem>>, vector<8x1xf32>
    %c0_3 = arith.constant 0 : index
    %c3 = arith.constant 3 : index
    %3 = vector.load %arg4[%c0_3, %c3] : memref<8x4xf32, #tpu.memory_space<vmem>>, vector<8x1xf32>
    %c0_4 = arith.constant 0 : index
    %c0_5 = arith.constant 0 : index
    %4 = vector.load %arg5[%c0_4, %c0_5] : memref<1x384xf32, #tpu.memory_space<vmem>>, vector<1x384xf32>
    %c0_6 = arith.constant 0 : index
    %c0_7 = arith.constant 0 : index
    %5 = vector.load %arg2[%c0_6, %c0_7] : memref<8x36xf32, #tpu.memory_space<vmem>>, vector<8x36xf32>
    %c0_8 = arith.constant 0 : index
    %c0_9 = arith.constant 0 : index
    %c0_10 = arith.constant 0 : index
    %6 = vector.load %arg1[%c0_8, %c0_9, %c0_10] : memref<4x4x512xf32, #tpu.memory_space<vmem>>, vector<1x4x512xf32>
    %7 = vector.shape_cast %6 : vector<1x4x512xf32> to vector<4x512xf32>
    %c1_11 = arith.constant 1 : index
    %c0_12 = arith.constant 0 : index
    %c0_13 = arith.constant 0 : index
    %8 = vector.load %arg1[%c1_11, %c0_12, %c0_13] : memref<4x4x512xf32, #tpu.memory_space<vmem>>, vector<1x4x512xf32>
    %9 = vector.shape_cast %8 : vector<1x4x512xf32> to vector<4x512xf32>
    %c2_14 = arith.constant 2 : index
    %c0_15 = arith.constant 0 : index
    %c0_16 = arith.constant 0 : index
    %10 = vector.load %arg1[%c2_14, %c0_15, %c0_16] : memref<4x4x512xf32, #tpu.memory_space<vmem>>, vector<1x4x512xf32>
    %11 = vector.shape_cast %10 : vector<1x4x512xf32> to vector<4x512xf32>
    %c3_17 = arith.constant 3 : index
    %c0_18 = arith.constant 0 : index
    %c0_19 = arith.constant 0 : index
    %12 = vector.load %arg1[%c3_17, %c0_18, %c0_19] : memref<4x4x512xf32, #tpu.memory_space<vmem>>, vector<1x4x512xf32>
    %13 = vector.shape_cast %12 : vector<1x4x512xf32> to vector<4x512xf32>
    %14 = vector.extract_strided_slice %13 {offsets = [0, 53], sizes = [4, 384], strides = [1, 1]} : vector<4x512xf32> to vector<4x384xf32>
    %15 = vector.extract_strided_slice %11 {offsets = [0, 54], sizes = [4, 384], strides = [1, 1]} : vector<4x512xf32> to vector<4x384xf32>
    %16 = vector.extract_strided_slice %13 {offsets = [0, 54], sizes = [4, 384], strides = [1, 1]} : vector<4x512xf32> to vector<4x384xf32>
    %17 = vector.extract_strided_slice %9 {offsets = [0, 63], sizes = [4, 384], strides = [1, 1]} : vector<4x512xf32> to vector<4x384xf32>
    %18 = vector.extract_strided_slice %7 {offsets = [0, 64], sizes = [4, 384], strides = [1, 1]} : vector<4x512xf32> to vector<4x384xf32>
    %19 = vector.extract_strided_slice %9 {offsets = [0, 64], sizes = [4, 384], strides = [1, 1]} : vector<4x512xf32> to vector<4x384xf32>
    %20 = vector.extract_strided_slice %13 {offsets = [0, 63], sizes = [4, 384], strides = [1, 1]} : vector<4x512xf32> to vector<4x384xf32>
    %21 = vector.extract_strided_slice %11 {offsets = [0, 64], sizes = [4, 384], strides = [1, 1]} : vector<4x512xf32> to vector<4x384xf32>
    %22 = vector.extract_strided_slice %13 {offsets = [0, 64], sizes = [4, 384], strides = [1, 1]} : vector<4x512xf32> to vector<4x384xf32>
    %23 = tpu.concatenate %14, %15, %16, %17, %18, %19, %20, %21, %22 in 0 : vector<4x384xf32>, vector<4x384xf32>, vector<4x384xf32>, vector<4x384xf32>, vector<4x384xf32>, vector<4x384xf32>, vector<4x384xf32>, vector<4x384xf32>, vector<4x384xf32> -> vector<36x384xf32>
    %cst = arith.constant dense<0.000000e+00> : vector<8x384xf32>
    %24 = tpu.matmul %5, %23, %cst {dimension_numbers = #tpu.dot_dimension_numbers<[1], [0], [0], [1], [0, 0, 1, 1], [], []>} : vector<8x36xf32>, vector<36x384xf32>, vector<8x384xf32> -> vector<8x384xf32>
    %25 = vector.extract_strided_slice %11 {offsets = [0, 54], sizes = [4, 384], strides = [1, 1]} : vector<4x512xf32> to vector<4x384xf32>
    %26 = vector.extract_strided_slice %13 {offsets = [0, 54], sizes = [4, 384], strides = [1, 1]} : vector<4x512xf32> to vector<4x384xf32>
    %27 = vector.extract_strided_slice %11 {offsets = [0, 55], sizes = [4, 384], strides = [1, 1]} : vector<4x512xf32> to vector<4x384xf32>
    %28 = vector.extract_strided_slice %7 {offsets = [0, 64], sizes = [4, 384], strides = [1, 1]} : vector<4x512xf32> to vector<4x384xf32>
    %29 = vector.extract_strided_slice %9 {offsets = [0, 64], sizes = [4, 384], strides = [1, 1]} : vector<4x512xf32> to vector<4x384xf32>
    %30 = vector.extract_strided_slice %7 {offsets = [0, 65], sizes = [4, 384], strides = [1, 1]} : vector<4x512xf32> to vector<4x384xf32>
    %31 = vector.extract_strided_slice %11 {offsets = [0, 64], sizes = [4, 384], strides = [1, 1]} : vector<4x512xf32> to vector<4x384xf32>
    %32 = vector.extract_strided_slice %13 {offsets = [0, 64], sizes = [4, 384], strides = [1, 1]} : vector<4x512xf32> to vector<4x384xf32>
    %33 = vector.extract_strided_slice %11 {offsets = [0, 65], sizes = [4, 384], strides = [1, 1]} : vector<4x512xf32> to vector<4x384xf32>
    %34 = tpu.concatenate %25, %26, %27, %28, %29, %30, %31, %32, %33 in 0 : vector<4x384xf32>, vector<4x384xf32>, vector<4x384xf32>, vector<4x384xf32>, vector<4x384xf32>, vector<4x384xf32>, vector<4x384xf32>, vector<4x384xf32>, vector<4x384xf32> -> vector<36x384xf32>
    %cst_20 = arith.constant dense<0.000000e+00> : vector<8x384xf32>
    %35 = tpu.matmul %5, %34, %cst_20 {dimension_numbers = #tpu.dot_dimension_numbers<[1], [0], [0], [1], [0, 0, 1, 1], [], []>} : vector<8x36xf32>, vector<36x384xf32>, vector<8x384xf32> -> vector<8x384xf32>
    %36 = vector.extract_strided_slice %9 {offsets = [0, 63], sizes = [4, 384], strides = [1, 1]} : vector<4x512xf32> to vector<4x384xf32>
    %37 = vector.extract_strided_slice %7 {offsets = [0, 64], sizes = [4, 384], strides = [1, 1]} : vector<4x512xf32> to vector<4x384xf32>
    %38 = vector.extract_strided_slice %9 {offsets = [0, 64], sizes = [4, 384], strides = [1, 1]} : vector<4x512xf32> to vector<4x384xf32>
    %39 = vector.extract_strided_slice %13 {offsets = [0, 63], sizes = [4, 384], strides = [1, 1]} : vector<4x512xf32> to vector<4x384xf32>
    %40 = vector.extract_strided_slice %11 {offsets = [0, 64], sizes = [4, 384], strides = [1, 1]} : vector<4x512xf32> to vector<4x384xf32>
    %41 = vector.extract_strided_slice %13 {offsets = [0, 64], sizes = [4, 384], strides = [1, 1]} : vector<4x512xf32> to vector<4x384xf32>
    %42 = vector.extract_strided_slice %9 {offsets = [0, 73], sizes = [4, 384], strides = [1, 1]} : vector<4x512xf32> to vector<4x384xf32>
    %43 = vector.extract_strided_slice %7 {offsets = [0, 74], sizes = [4, 384], strides = [1, 1]} : vector<4x512xf32> to vector<4x384xf32>
    %44 = vector.extract_strided_slice %9 {offsets = [0, 74], sizes = [4, 384], strides = [1, 1]} : vector<4x512xf32> to vector<4x384xf32>
    %45 = tpu.concatenate %36, %37, %38, %39, %40, %41, %42, %43, %44 in 0 : vector<4x384xf32>, vector<4x384xf32>, vector<4x384xf32>, vector<4x384xf32>, vector<4x384xf32>, vector<4x384xf32>, vector<4x384xf32>, vector<4x384xf32>, vector<4x384xf32> -> vector<36x384xf32>
    %cst_21 = arith.constant dense<0.000000e+00> : vector<8x384xf32>
    %46 = tpu.matmul %5, %45, %cst_21 {dimension_numbers = #tpu.dot_dimension_numbers<[1], [0], [0], [1], [0, 0, 1, 1], [], []>} : vector<8x36xf32>, vector<36x384xf32>, vector<8x384xf32> -> vector<8x384xf32>
    %47 = vector.extract_strided_slice %7 {offsets = [0, 64], sizes = [4, 384], strides = [1, 1]} : vector<4x512xf32> to vector<4x384xf32>
    %48 = vector.extract_strided_slice %9 {offsets = [0, 64], sizes = [4, 384], strides = [1, 1]} : vector<4x512xf32> to vector<4x384xf32>
    %49 = vector.extract_strided_slice %7 {offsets = [0, 65], sizes = [4, 384], strides = [1, 1]} : vector<4x512xf32> to vector<4x384xf32>
    %50 = vector.extract_strided_slice %11 {offsets = [0, 64], sizes = [4, 384], strides = [1, 1]} : vector<4x512xf32> to vector<4x384xf32>
    %51 = vector.extract_strided_slice %13 {offsets = [0, 64], sizes = [4, 384], strides = [1, 1]} : vector<4x512xf32> to vector<4x384xf32>
    %52 = vector.extract_strided_slice %11 {offsets = [0, 65], sizes = [4, 384], strides = [1, 1]} : vector<4x512xf32> to vector<4x384xf32>
    %53 = vector.extract_strided_slice %7 {offsets = [0, 74], sizes = [4, 384], strides = [1, 1]} : vector<4x512xf32> to vector<4x384xf32>
    %54 = vector.extract_strided_slice %9 {offsets = [0, 74], sizes = [4, 384], strides = [1, 1]} : vector<4x512xf32> to vector<4x384xf32>
    %55 = vector.extract_strided_slice %7 {offsets = [0, 75], sizes = [4, 384], strides = [1, 1]} : vector<4x512xf32> to vector<4x384xf32>
    %56 = tpu.concatenate %47, %48, %49, %50, %51, %52, %53, %54, %55 in 0 : vector<4x384xf32>, vector<4x384xf32>, vector<4x384xf32>, vector<4x384xf32>, vector<4x384xf32>, vector<4x384xf32>, vector<4x384xf32>, vector<4x384xf32>, vector<4x384xf32> -> vector<36x384xf32>
    %cst_22 = arith.constant dense<0.000000e+00> : vector<8x384xf32>
    %57 = tpu.matmul %5, %56, %cst_22 {dimension_numbers = #tpu.dot_dimension_numbers<[1], [0], [0], [1], [0, 0, 1, 1], [], []>} : vector<8x36xf32>, vector<36x384xf32>, vector<8x384xf32> -> vector<8x384xf32>
    %58 = vector.shape_cast %4 : vector<1x384xf32> to vector<1x384xf32>
    %59 = vector.broadcast %58 : vector<1x384xf32> to vector<8x384xf32>
    %cst_23 = arith.constant 0.000000e+00 : f32
    %60 = vector.broadcast %cst_23 : f32 to vector<8x1xf32>
    %cst_24 = arith.constant 0.000000e+00 : f32
    %61 = vector.broadcast %cst_24 : f32 to vector<8x1xf32>
    %62 = arith.mulf %24, %59 : vector<8x384xf32>
    %cst_25 = arith.constant dense<0.000000e+00> : vector<8xf32>
    %63 = vector.multi_reduction <add>, %62, %cst_25 [1] : vector<8x384xf32> to vector<8xf32>
    %64 = vector.shape_cast %63 : vector<8xf32> to vector<8x1xf32>
    %65 = arith.addf %60, %64 : vector<8x1xf32>
    %66 = arith.mulf %62, %62 : vector<8x384xf32>
    %cst_26 = arith.constant dense<0.000000e+00> : vector<8xf32>
    %67 = vector.multi_reduction <add>, %66, %cst_26 [1] : vector<8x384xf32> to vector<8xf32>
    %68 = vector.shape_cast %67 : vector<8xf32> to vector<8x1xf32>
    %69 = arith.addf %61, %68 : vector<8x1xf32>
    %70 = arith.mulf %35, %59 : vector<8x384xf32>
    %cst_27 = arith.constant dense<0.000000e+00> : vector<8xf32>
    %71 = vector.multi_reduction <add>, %70, %cst_27 [1] : vector<8x384xf32> to vector<8xf32>
    %72 = vector.shape_cast %71 : vector<8xf32> to vector<8x1xf32>
    %73 = arith.addf %65, %72 : vector<8x1xf32>
    %74 = arith.mulf %70, %70 : vector<8x384xf32>
    %cst_28 = arith.constant dense<0.000000e+00> : vector<8xf32>
    %75 = vector.multi_reduction <add>, %74, %cst_28 [1] : vector<8x384xf32> to vector<8xf32>
    %76 = vector.shape_cast %75 : vector<8xf32> to vector<8x1xf32>
    %77 = arith.addf %69, %76 : vector<8x1xf32>
    %78 = arith.mulf %46, %59 : vector<8x384xf32>
    %cst_29 = arith.constant dense<0.000000e+00> : vector<8xf32>
    %79 = vector.multi_reduction <add>, %78, %cst_29 [1] : vector<8x384xf32> to vector<8xf32>
    %80 = vector.shape_cast %79 : vector<8xf32> to vector<8x1xf32>
    %81 = arith.addf %73, %80 : vector<8x1xf32>
    %82 = arith.mulf %78, %78 : vector<8x384xf32>
    %cst_30 = arith.constant dense<0.000000e+00> : vector<8xf32>
    %83 = vector.multi_reduction <add>, %82, %cst_30 [1] : vector<8x384xf32> to vector<8xf32>
    %84 = vector.shape_cast %83 : vector<8xf32> to vector<8x1xf32>
    %85 = arith.addf %77, %84 : vector<8x1xf32>
    %86 = arith.mulf %57, %59 : vector<8x384xf32>
    %cst_31 = arith.constant dense<0.000000e+00> : vector<8xf32>
    %87 = vector.multi_reduction <add>, %86, %cst_31 [1] : vector<8x384xf32> to vector<8xf32>
    %88 = vector.shape_cast %87 : vector<8xf32> to vector<8x1xf32>
    %89 = arith.addf %81, %88 : vector<8x1xf32>
    %90 = arith.mulf %86, %86 : vector<8x384xf32>
    %cst_32 = arith.constant dense<0.000000e+00> : vector<8xf32>
    %91 = vector.multi_reduction <add>, %90, %cst_32 [1] : vector<8x384xf32> to vector<8xf32>
    %92 = vector.shape_cast %91 : vector<8xf32> to vector<8x1xf32>
    %93 = arith.addf %85, %92 : vector<8x1xf32>
    %cst_33 = arith.constant 0.001953125 : f32
    %94 = vector.broadcast %cst_33 : f32 to vector<8x1xf32>
    %95 = arith.mulf %89, %94 : vector<8x1xf32>
    %cst_34 = arith.constant 0.001953125 : f32
    %96 = vector.broadcast %cst_34 : f32 to vector<8x1xf32>
    %97 = arith.mulf %93, %96 : vector<8x1xf32>
    %98 = arith.mulf %95, %95 : vector<8x1xf32>
    %99 = arith.subf %97, %98 : vector<8x1xf32>
    %cst_35 = arith.constant 9.99999974E-6 : f32
    %100 = vector.broadcast %cst_35 : f32 to vector<8x1xf32>
    %101 = arith.addf %99, %100 : vector<8x1xf32>
    %102 = math.rsqrt %101 : vector<8x1xf32>
    %103 = arith.mulf %102, %0 : vector<8x1xf32>
    %104 = arith.mulf %95, %103 : vector<8x1xf32>
    %105 = arith.subf %1, %104 : vector<8x1xf32>
    %106 = vector.broadcast %103 : vector<8x1xf32> to vector<8x384xf32>
    %107 = arith.mulf %24, %106 : vector<8x384xf32>
    %108 = vector.broadcast %105 : vector<8x1xf32> to vector<8x384xf32>
    %109 = arith.addf %107, %108 : vector<8x384xf32>
    %cst_36 = arith.constant 0.000000e+00 : f32
    %110 = vector.broadcast %cst_36 : f32 to vector<8x384xf32>
    %111 = arith.maximumf %109, %110 : vector<8x384xf32>
    %112 = vector.broadcast %103 : vector<8x1xf32> to vector<8x384xf32>
    %113 = arith.mulf %35, %112 : vector<8x384xf32>
    %114 = vector.broadcast %105 : vector<8x1xf32> to vector<8x384xf32>
    %115 = arith.addf %113, %114 : vector<8x384xf32>
    %cst_37 = arith.constant 0.000000e+00 : f32
    %116 = vector.broadcast %cst_37 : f32 to vector<8x384xf32>
    %117 = arith.maximumf %115, %116 : vector<8x384xf32>
    %118 = vector.broadcast %103 : vector<8x1xf32> to vector<8x384xf32>
    %119 = arith.mulf %46, %118 : vector<8x384xf32>
    %120 = vector.broadcast %105 : vector<8x1xf32> to vector<8x384xf32>
    %121 = arith.addf %119, %120 : vector<8x384xf32>
    %cst_38 = arith.constant 0.000000e+00 : f32
    %122 = vector.broadcast %cst_38 : f32 to vector<8x384xf32>
    %123 = arith.maximumf %121, %122 : vector<8x384xf32>
    %124 = vector.broadcast %103 : vector<8x1xf32> to vector<8x384xf32>
    %125 = arith.mulf %57, %124 : vector<8x384xf32>
    %126 = vector.broadcast %105 : vector<8x1xf32> to vector<8x384xf32>
    %127 = arith.addf %125, %126 : vector<8x384xf32>
    %cst_39 = arith.constant 0.000000e+00 : f32
    %128 = vector.broadcast %cst_39 : f32 to vector<8x384xf32>
    %129 = arith.maximumf %127, %128 : vector<8x384xf32>
    %130 = arith.maximumf %111, %117 : vector<8x384xf32>
    %131 = arith.maximumf %123, %129 : vector<8x384xf32>
    %132 = arith.maximumf %130, %131 : vector<8x384xf32>
    %133 = arith.mulf %132, %59 : vector<8x384xf32>
    %134 = vector.extract_strided_slice %133 {offsets = [0, 53], sizes = [8, 256], strides = [1, 1]} : vector<8x384xf32> to vector<8x256xf32>
    %135 = vector.extract_strided_slice %133 {offsets = [0, 54], sizes = [8, 256], strides = [1, 1]} : vector<8x384xf32> to vector<8x256xf32>
    %136 = vector.extract_strided_slice %133 {offsets = [0, 55], sizes = [8, 256], strides = [1, 1]} : vector<8x384xf32> to vector<8x256xf32>
    %137 = vector.extract_strided_slice %133 {offsets = [0, 63], sizes = [8, 256], strides = [1, 1]} : vector<8x384xf32> to vector<8x256xf32>
    %138 = vector.extract_strided_slice %133 {offsets = [0, 64], sizes = [8, 256], strides = [1, 1]} : vector<8x384xf32> to vector<8x256xf32>
    %139 = vector.extract_strided_slice %133 {offsets = [0, 65], sizes = [8, 256], strides = [1, 1]} : vector<8x384xf32> to vector<8x256xf32>
    %140 = vector.extract_strided_slice %133 {offsets = [0, 73], sizes = [8, 256], strides = [1, 1]} : vector<8x384xf32> to vector<8x256xf32>
    %141 = vector.extract_strided_slice %133 {offsets = [0, 74], sizes = [8, 256], strides = [1, 1]} : vector<8x384xf32> to vector<8x256xf32>
    %142 = vector.extract_strided_slice %133 {offsets = [0, 75], sizes = [8, 256], strides = [1, 1]} : vector<8x384xf32> to vector<8x256xf32>
    %143 = tpu.concatenate %134, %135, %136, %137, %138, %139, %140, %141, %142 in 0 : vector<8x256xf32>, vector<8x256xf32>, vector<8x256xf32>, vector<8x256xf32>, vector<8x256xf32>, vector<8x256xf32>, vector<8x256xf32>, vector<8x256xf32>, vector<8x256xf32> -> vector<72x256xf32>
    %c0_40 = arith.constant 0 : index
    %c0_41 = arith.constant 0 : index
    %144 = vector.load %arg3[%c0_40, %c0_41] : memref<8x72xf32, #tpu.memory_space<vmem>>, vector<8x72xf32>
    %cst_42 = arith.constant dense<0.000000e+00> : vector<8x256xf32>
    %145 = tpu.matmul %144, %143, %cst_42 {dimension_numbers = #tpu.dot_dimension_numbers<[1], [0], [0], [1], [0, 0, 1, 1], [], []>} : vector<8x72xf32>, vector<72x256xf32>, vector<8x256xf32> -> vector<8x256xf32>
    %146 = vector.extract_strided_slice %4 {offsets = [0, 64], sizes = [1, 256], strides = [1, 1]} : vector<1x384xf32> to vector<1x256xf32>
    %147 = vector.broadcast %146 : vector<1x256xf32> to vector<8x256xf32>
    %148 = arith.mulf %145, %147 : vector<8x256xf32>
    %cst_43 = arith.constant dense<0.000000e+00> : vector<8xf32>
    %149 = vector.multi_reduction <add>, %148, %cst_43 [1] : vector<8x256xf32> to vector<8xf32>
    %150 = vector.shape_cast %149 : vector<8xf32> to vector<8x1xf32>
    %cst_44 = arith.constant 7.812500e-03 : f32
    %151 = vector.broadcast %cst_44 : f32 to vector<8x1xf32>
    %152 = arith.mulf %150, %151 : vector<8x1xf32>
    %153 = arith.mulf %148, %148 : vector<8x256xf32>
    %cst_45 = arith.constant dense<0.000000e+00> : vector<8xf32>
    %154 = vector.multi_reduction <add>, %153, %cst_45 [1] : vector<8x256xf32> to vector<8xf32>
    %155 = vector.shape_cast %154 : vector<8xf32> to vector<8x1xf32>
    %cst_46 = arith.constant 7.812500e-03 : f32
    %156 = vector.broadcast %cst_46 : f32 to vector<8x1xf32>
    %157 = arith.mulf %155, %156 : vector<8x1xf32>
    %158 = arith.mulf %152, %152 : vector<8x1xf32>
    %159 = arith.subf %157, %158 : vector<8x1xf32>
    %cst_47 = arith.constant 9.99999974E-6 : f32
    %160 = vector.broadcast %cst_47 : f32 to vector<8x1xf32>
    %161 = arith.addf %159, %160 : vector<8x1xf32>
    %162 = math.rsqrt %161 : vector<8x1xf32>
    %163 = arith.mulf %162, %2 : vector<8x1xf32>
    %164 = vector.broadcast %152 : vector<8x1xf32> to vector<8x256xf32>
    %165 = arith.subf %145, %164 : vector<8x256xf32>
    %166 = vector.broadcast %163 : vector<8x1xf32> to vector<8x256xf32>
    %167 = arith.mulf %165, %166 : vector<8x256xf32>
    %168 = vector.broadcast %3 : vector<8x1xf32> to vector<8x256xf32>
    %169 = arith.addf %167, %168 : vector<8x256xf32>
    %cst_48 = arith.constant 0.000000e+00 : f32
    %170 = vector.broadcast %cst_48 : f32 to vector<8x256xf32>
    %171 = arith.maximumf %169, %170 : vector<8x256xf32>
    %c0_49 = arith.constant 0 : index
    %c0_50 = arith.constant 0 : index
    %172 = vector.load %arg6[%c0_49, %c0_50] : memref<8x256xf32, #tpu.memory_space<vmem>>, vector<8x256xf32>
    tpu.vector_store %arg6[%c0_49, %c0_50], %171 {strides = array<i32>} : memref<8x256xf32, #tpu.memory_space<vmem>>, vector<8x256xf32>,
    return
  }
  func.func @transform_0(%arg0: i32) -> (i32, i32, i32) {
    %c0_i32 = arith.constant 0 : i32
    %c0_i32_0 = arith.constant 0 : i32
    %c0_i32_1 = arith.constant 0 : i32
    %c0_i32_2 = arith.constant 0 : i32
    return %c0_i32, %c0_i32_0, %c0_i32_1 : i32, i32, i32
  }
  func.func @transform_1(%arg0: i32) -> (i32, i32) {
    %c0_i32 = arith.constant 0 : i32
    %c0_i32_0 = arith.constant 0 : i32
    %c0_i32_1 = arith.constant 0 : i32
    return %c0_i32, %c0_i32_0 : i32, i32
  }
  func.func @transform_2(%arg0: i32) -> (i32, i32) {
    %c0_i32 = arith.constant 0 : i32
    %c0_i32_0 = arith.constant 0 : i32
    %c0_i32_1 = arith.constant 0 : i32
    return %c0_i32, %c0_i32_0 : i32, i32
  }
  func.func @transform_3(%arg0: i32) -> (i32, i32) {
    %c0_i32 = arith.constant 0 : i32
    %c0_i32_0 = arith.constant 0 : i32
    %c0_i32_1 = arith.constant 0 : i32
    return %c0_i32, %c0_i32_0 : i32, i32
  }
  func.func @transform_4(%arg0: i32) -> (i32, i32) {
    %c0_i32 = arith.constant 0 : i32
    %c0_i32_0 = arith.constant 0 : i32
    %c0_i32_1 = arith.constant 0 : i32
    return %c0_i32, %c0_i32_0 : i32, i32
  }
  func.func @transform_5(%arg0: i32) -> (i32, i32) {
    %c0_i32 = arith.constant 0 : i32
    %c0_i32_0 = arith.constant 0 : i32
    %c0_i32_1 = arith.constant 0 : i32
    return %c0_i32, %c0_i32_0 : i32, i32
  }
}

</mosaic_0001>

<bundles_post_ra>
// kernel: tpu_custom_call.1
= control target key start
LH: loop header
LB: loop body
LE: loop exit
PB: predicated region body
PF: predicated region fallthrough
CT: control target
= control target key end

     0   :  { %10 = vsyncpa [#allocation3], 0  ;;  %s3701_s0 = inlined_call_operand.hbm [shape: f32[4,4,512], index: 0, kind: input, shape index: {}]   ;;  %s3702_s1 = inlined_call_operand.vmem [shape: f32[8,36], index: 1, kind: input, shape index: {}]   ;;  %s3703_s2 = inlined_call_operand.hbm [shape: f32[8,72], index: 2, kind: input, shape index: {}]   ;;  %s3704_s3 = inlined_call_operand.vmem [shape: f32[8,4], index: 3, kind: input, shape index: {}]   ;;  %s3705_s4 = inlined_call_operand.vmem [shape: f32[1,384], index: 4, kind: input, shape index: {}]   ;;  %s3706_s5 = inlined_call_operand.hbm [shape: f32[8,256], index: 5, kind: output, shape index: {}]  }
   0x1   :  { %11 = vsyncpa [#allocation6], 0 }
   0x2   :  { %12 = vsyncpa [#allocation4], 0  ;;  %s17_s20 = sshll.u32 %s3701_s0, 4  ;;  %s2499_s21 = smov [#allocation2]   ;;  %s18_s20 = int_to_ptr.hbm [resolvable:$true] %s17_s20 }
   0x3   :  { %s19_s22 = sshll.u32 %s2499_s21, 4  ;;  %s33_s25 = sshll.u32 %s3703_s2, 4  ;;  %s20_s22 = int_to_ptr.vmem [resolvable:$true] %s19_s22  ;;  %s34_s25 = int_to_ptr.hbm [resolvable:$true] %s33_s25 }
   0x4   :  { %s2500_s26 = smov 256   ;;  %s2501_s27 = smov 16  }
   0x5   :  { %25 = dma.hbm_to_vmem [thread:$0]  %s18_s20, 1024, %s20_s22, [#allocation3], %s2500_s26, %s2500_s26, %s2501_s27  }
   0x6   :  { %s2502_s28 = smov [#allocation5]  }
   0x7   :  { %s35_s29 = sshll.u32 %s2502_s28, 4  ;;  %s36_s29 = int_to_ptr.vmem [resolvable:$true] %s35_s29 }
   0x8   :  { %38 = dma.hbm_to_vmem [thread:$0]  %s34_s25, 128, %s36_s29, [#allocation6]  }
   0x9   :  { %2493 = dma.done.wait [#allocation3], 1024  }
   0xa   :  { %2494 = vsyncadd [#allocation3], 4294966272 }
   0xb   :  { %2495 = dma.done.wait [#allocation6], 128  }
   0xc   :  { %2496 = vsyncadd [#allocation6], 4294967168  ;;  %v2557_v0 = vld [vmem:[#allocation2 + $0x30] sm:$0xff]  ;;  %v2560_v1 = vld [vmem:[#allocation2 + $0x38] sm:$0xff]  ;;  %s2503_s0 = smov 127   ;;  %s2504_s2 = smov 118  }
   0xd   :  { %67 = vst [vmem:[#allocation1] ss:$2 sm:$0xff] %v2557_v0  ;;  %v2563_v2 = vld [vmem:[#allocation2 + $0x20] sm:$0xff]  ;;  %v2565_v3 = vld [vmem:[#allocation2 + $0x28] sm:$0xff]  ;;  %v2580_v13 = vld [vmem:[#allocation2 + $0x10] sm:$0xff]  ;;  %s2505_s30 = smov 117  }
   0xe   :  { %69 = vst [vmem:[#allocation1 + $0x10] ss:$2 sm:$0xff] %v2560_v1  ;;  %v2582_v15 = vld [vmem:[#allocation2 + $0x18] sm:$0xff]  ;;  %v2588_v21 = vld [vmem:[#allocation2] sm:$0xff]  ;;  %v2590_v23 = vld [vmem:[#allocation2 + $0x8] sm:$0xff]  ;;  %vm263_vm0 = vcmask 1043456  }
   0xf   :  { %s2506_s6 = smov 74   ;;  %vm96_vm1 = vcmask 1039360   ;;  %s2507_s7 = smov 75   ;;  %vm144_vm2 = vcmask 965632   ;;  %vm169_vm3 = vcmask 957440   ;;  %vm336_vm4 = vcmask 613376  }
  0x10   :  { %s2508_s8 = smov 65   ;;  %s2509_s9 = smov 64   ;;  %vm682_vm5 = vcmask 605184   ;;  %vm364_vm6 = vcmask 293888   ;;  %vm1024_vm7 = vcmask 531456   ;;  %vm1344_vm8 = vcmask 523264  }
  0x11   :  { %s2511_s14 = smov 1   ;;  %s2514_s15 = smov 106   ;;  %vm1658_vm12 = vcmask 867328   ;;  %vm1649_vm13 = vcmask 875520   ;;  %vm1640_vm14 = vcmask 883712   ;;  %vm1631_vm15 = vcmask 949248  }
  0x12   :  { %s2515_s16 = smov 116   ;;  %s2516_s17 = smov 108  }
  0x13   :  { %s2517_s18 = smov 126   ;;  %s2520_s19 = smov [#allocation7]  }
  0x14   :  { %v2567_v4 = vld.sshfl [vmem:[#allocation1] sm:$0xff pattern:$0x75316420]  ;;  %v2569_v5 = vld.sshfl [vmem:[#allocation1 + $0x8] sm:$0xff pattern:$0x75316420] }
  0x15   :  { %81 = vst [vmem:[#allocation1 + $0x1] ss:$2 sm:$0xff] %v2563_v2  ;;  %v2572_v6 = vld.sshfl [vmem:[#allocation1 + $0x10] sm:$0xff pattern:$0x75316420]  ;;  %s1857_s20 = sshll.u32 %s2520_s19, 4  ;;  %s1858_s20 = int_to_ptr.vmem [resolvable:$true] %s1857_s20 }
  0x16   :  { %v2574_v7 = vld.sshfl [vmem:[#allocation1 + $0x18] sm:$0xff pattern:$0x75316420]  ;;  %s1859_s23 = sshll.u32 %s3706_s5, 4  ;;  %s1860_s23 = int_to_ptr.hbm [resolvable:$true] %s1859_s23 }
  0x17   :  { %83 = vst [vmem:[#allocation1 + $0x11] ss:$2 sm:$0xff] %v2565_v3 }
  0x1c   :  { %v84_v8 = vld.sshfl [vmem:[#allocation1] sm:$0xff pattern:$0x75316420]  ;;  %v85_v9 = vld.sshfl [vmem:[#allocation1 + $0x8] sm:$0xff pattern:$0x75316420] }
  0x1d   :  { %v1918_v10 = vpack.i.bf16 %v85_v9, %v84_v8  ;;  %104 = vst [vmem:[#allocation1] ss:$2 sm:$0xff] %v2557_v0 }
  0x1e   :  { %v86_v11 = vld.sshfl [vmem:[#allocation1 + $0x10] sm:$0xff pattern:$0x75316420]  ;;  %v87_v12 = vld.sshfl [vmem:[#allocation1 + $0x18] sm:$0xff pattern:$0x75316420] }
  0x1f   :  { %1919 = vrot.lane.b32.xlu0 %v1918_v10, %s2503_s0  ;;  %106 = vst [vmem:[#allocation1 + $0x10] ss:$2 sm:$0xff] %v2560_v1  ;;  %v1923_v14 = vpack.i.bf16 %v87_v12, %v86_v11 }
  0x24   :  { %v107_v16 = vld.sshfl [vmem:[#allocation1] sm:$0xff pattern:$0x75316420]  ;;  %v108_v17 = vld.sshfl [vmem:[#allocation1 + $0x8] sm:$0xff pattern:$0x75316420] }
  0x25   :  { %v1928_v18 = vpack.i.bf16 %v108_v17, %v107_v16  ;;  %129 = vst [vmem:[#allocation1 + $0x1] ss:$2 sm:$0xff] %v2580_v13 }
  0x26   :  { %v109_v19 = vld.sshfl [vmem:[#allocation1 + $0x10] sm:$0xff pattern:$0x75316420]  ;;  %v110_v20 = vld.sshfl [vmem:[#allocation1 + $0x18] sm:$0xff pattern:$0x75316420] }
  0x27   :  { %1924 = vrot.lane.b32.xlu0 %v1923_v14, %s2503_s0  ;;  %1929 = vrot.lane.b32.xlu1 %v1928_v18, %s2503_s0  ;;  %131 = vst [vmem:[#allocation1 + $0x11] ss:$2 sm:$0xff] %v2582_v15  ;;  %v1933_v22 = vpack.i.bf16 %v110_v20, %v109_v19 }
  0x2c   :  { %v132_v24 = vld.sshfl [vmem:[#allocation1] sm:$0xff pattern:$0x75316420]  ;;  %v133_v25 = vld.sshfl [vmem:[#allocation1 + $0x8] sm:$0xff pattern:$0x75316420] }
  0x2d   :  { %154 = vst [vmem:[#allocation1] ss:$2 sm:$0xff] %v2588_v21  ;;  %v1938_v26 = vpack.i.bf16 %v133_v25, %v132_v24 }
  0x2e   :  { %v134_v27 = vld.sshfl [vmem:[#allocation1 + $0x10] sm:$0xff pattern:$0x75316420]  ;;  %v135_v28 = vld.sshfl [vmem:[#allocation1 + $0x18] sm:$0xff pattern:$0x75316420] }
  0x2f   :  { %1934 = vrot.lane.b32.xlu1 %v1933_v22, %s2503_s0  ;;  %156 = vst [vmem:[#allocation1 + $0x10] ss:$2 sm:$0xff] %v2590_v23  ;;  %1939 = vrot.lane.b32.xlu2 %v1938_v26, %s2504_s2  ;;  %v1943_v29 = vpack.i.bf16 %v135_v28, %v134_v27 }
  0x34   :  { %v157_v30 = vld.sshfl [vmem:[#allocation1] sm:$0xff pattern:$0x75316420]  ;;  %v158_v31 = vld.sshfl [vmem:[#allocation1 + $0x8] sm:$0xff pattern:$0x75316420] }
  0x35   :  { %v1948_v32 = vpack.i.bf16 %v158_v31, %v157_v30  ;;  %178 = vst [vmem:[#allocation1 + $0x1] ss:$2 sm:$0xff] %v2580_v13 }
  0x36   :  { %v159_v33 = vld.sshfl [vmem:[#allocation1 + $0x10] sm:$0xff pattern:$0x75316420]  ;;  %v160_v34 = vld.sshfl [vmem:[#allocation1 + $0x18] sm:$0xff pattern:$0x75316420] }
  0x37   :  { %v1953_v35 = vpack.i.bf16 %v160_v34, %v159_v33  ;;  %180 = vst [vmem:[#allocation1 + $0x11] ss:$2 sm:$0xff] %v2582_v15  ;;  %1949 = vrot.lane.b32.xlu0 %v1948_v32, %s2505_s30  ;;  %1944 = vrot.lane.b32.xlu2 %v1943_v29, %s2504_s2 }
  0x39   :  { %1954 = vrot.lane.b32.xlu1 %v1953_v35, %s2505_s30 }
  0x3c   :  { %v181_v36 = vld.sshfl [vmem:[#allocation1] sm:$0xff pattern:$0x75316420]  ;;  %v182_v37 = vld.sshfl [vmem:[#allocation1 + $0x8] sm:$0xff pattern:$0x75316420] }
  0x3d   :  { %200 = vst [vmem:[#allocation1] ss:$2 sm:$0xff] %v2557_v0  ;;  %v1958_v38 = vpack.i.bf16 %v182_v37, %v181_v36 }
  0x3e   :  { %v183_v39 = vld.sshfl [vmem:[#allocation1 + $0x10] sm:$0xff pattern:$0x75316420]  ;;  %v184_v40 = vld.sshfl [vmem:[#allocation1 + $0x18] sm:$0xff pattern:$0x75316420] }
  0x3f   :  { %v1963_v41 = vpack.i.bf16 %v184_v40, %v183_v39  ;;  %202 = vst [vmem:[#allocation1 + $0x10] ss:$2 sm:$0xff] %v2560_v1  ;;  %1959 = vrot.lane.b32.xlu2 %v1958_v38, %s2505_s30 }
  0x41   :  { %1964 = vrot.lane.b32.xlu0 %v1963_v41, %s2505_s30 }
  0x44   :  { %v203_v42 = vld.sshfl [vmem:[#allocation1] sm:$0xff pattern:$0x75316420]  ;;  %v204_v43 = vld.sshfl [vmem:[#allocation1 + $0x8] sm:$0xff pattern:$0x75316420] }
  0x45   :  { %v1968_v44 = vpack.i.bf16 %v204_v43, %v203_v42  ;;  %223 = vst [vmem:[#allocation1 + $0x1] ss:$2 sm:$0xff] %v2563_v2 }
  0x46   :  { %v205_v45 = vld.sshfl [vmem:[#allocation1 + $0x10] sm:$0xff pattern:$0x75316420]  ;;  %v206_v46 = vld.sshfl [vmem:[#allocation1 + $0x18] sm:$0xff pattern:$0x75316420] }
  0x47   :  { %1969 = vrot.lane.b32.xlu1 %v1968_v44, %s2504_s2  ;;  %225 = vst [vmem:[#allocation1 + $0x11] ss:$2 sm:$0xff] %v2565_v3  ;;  %v1973_v47 = vpack.i.bf16 %v206_v46, %v205_v45 }
  0x49   :  { %1974 = vrot.lane.b32.xlu2 %v1973_v47, %s2504_s2 }
  0x4c   :  { %v226_v48 = vld.sshfl [vmem:[#allocation1] sm:$0xff pattern:$0x75316420]  ;;  %v227_v49 = vld.sshfl [vmem:[#allocation1 + $0x8] sm:$0xff pattern:$0x75316420] }
  0x4d   :  { %v1978_v50 = vpack.i.bf16 %v227_v49, %v226_v48  ;;  %245 = vst [vmem:[#allocation1] ss:$2 sm:$0xff] %v2557_v0 }
  0x4e   :  { %v228_v51 = vld.sshfl [vmem:[#allocation1 + $0x10] sm:$0xff pattern:$0x75316420]  ;;  %v229_v52 = vld.sshfl [vmem:[#allocation1 + $0x18] sm:$0xff pattern:$0x75316420] }
  0x4f   :  { %v1983_v53 = vpack.i.bf16 %v229_v52, %v228_v51  ;;  %247 = vst [vmem:[#allocation1 + $0x10] ss:$2 sm:$0xff] %v2560_v1  ;;  %1979 = vrot.lane.b32.xlu0 %v1978_v50, %s2505_s30 }
  0x51   :  { %1984 = vrot.lane.b32.xlu1 %v1983_v53, %s2505_s30 }
  0x54   :  { %v249_v54 = vld.sshfl [vmem:[#allocation1 + $0x8] sm:$0xff pattern:$0x75316420]  ;;  %v248_v55 = vld.sshfl [vmem:[#allocation1] sm:$0xff pattern:$0x75316420] }
  0x55   :  { %434 = vst [vmem:[#allocation1] ss:$2 sm:$0xff] %v2563_v2  ;;  %252 = vrot.lane.b32.xlu2 %v248_v55, %s2505_s30 }
  0x56   :  { %v250_v56 = vld.sshfl [vmem:[#allocation1 + $0x10] sm:$0xff pattern:$0x75316420]  ;;  %v251_v57 = vld.sshfl [vmem:[#allocation1 + $0x18] sm:$0xff pattern:$0x75316420] }
  0x57   :  { %436 = vst [vmem:[#allocation1 + $0x10] ss:$2 sm:$0xff] %v2565_v3  ;;  %254 = vrot.lane.b32.xlu0 %v249_v54, %s2505_s30 }
  0x59   :  { %256 = vrot.lane.b32.xlu1 %v250_v56, %s2505_s30 }
  0x5c   :  { %v437_v58 = vld.sshfl [vmem:[#allocation1] sm:$0xff pattern:$0x75316420]  ;;  %v438_v59 = vld.sshfl [vmem:[#allocation1 + $0x8] sm:$0xff pattern:$0x75316420] }
  0x5d   :  { %446 = vst [vmem:[#allocation1 + $0x1] ss:$2 sm:$0xff] %v2557_v0  ;;  %258 = vrot.lane.b32.xlu2 %v251_v57, %s2505_s30 }
  0x5e   :  { %v2620_v60 = vld.sshfl [vmem:[#allocation1 + $0x10] sm:$0xff pattern:$0x75316420]  ;;  %v2622_v61 = vld.sshfl [vmem:[#allocation1 + $0x18] sm:$0xff pattern:$0x75316420] }
  0x5f   :  { %3719 = vst [vmem:[#allocation11_spill] sm:$0xff] %v2620_v60 }
  0x60   :  { %3720 = vst [vmem:[#allocation12_spill] sm:$0xff] %v2622_v61 }
  0x61   :  { %448 = vst [vmem:[#allocation1 + $0x11] ss:$2 sm:$0xff] %v2560_v1 }
  0x64   :  { %v449_v62 = vld.sshfl [vmem:[#allocation1] sm:$0xff pattern:$0x75316420]  ;;  %v450_v63 = vld.sshfl [vmem:[#allocation1 + $0x8] sm:$0xff pattern:$0x75316420] }
  0x65   :  { %v610_v8 = vsel %vm263_vm0, %v437_v58, %v449_v62  ;;  %v611_v9 = vsel %vm263_vm0, %v438_v59, %v450_v63  ;;  %457 = vst [vmem:[#allocation1] ss:$2 sm:$0xff] %v2563_v2 }
  0x66   :  { %v1988_v10 = vpack.i.bf16 %v611_v9, %v610_v8 }
  0x68   :  { %v2628_v11 = vld.sshfl [vmem:[#allocation1 + $0x10] sm:$0xff pattern:$0x75316420]  ;;  %v2630_v12 = vld.sshfl [vmem:[#allocation1 + $0x18] sm:$0xff pattern:$0x75316420]  ;;  %1989 = vrot.lane.b32.xlu0 %v1988_v10, %s2506_s6 }
  0x69   :  { %3721 = vst [vmem:[#allocation13_spill] sm:$0xff] %v2628_v11 }
  0x6a   :  { %3722 = vst [vmem:[#allocation14_spill] sm:$0xff] %v2630_v12 }
  0x6b   :  { %459 = vst [vmem:[#allocation1 + $0x10] ss:$2 sm:$0xff] %v2565_v3 }
  0x6c   :  { %v460_v14 = vld.sshfl [vmem:[#allocation1] sm:$0xff pattern:$0x75316420]  ;;  %v461_v16 = vld.sshfl [vmem:[#allocation1 + $0x8] sm:$0xff pattern:$0x75316420] }
  0x6d   :  { %480 = vst [vmem:[#allocation1 + $0x1] ss:$2 sm:$0xff] %v2588_v21  ;;  %v1993_v17 = vpack.i.bf16 %v461_v16, %v460_v14 }
  0x6f   :  { %1994 = vrot.lane.b32.xlu1 %v1993_v17, %s2503_s0 }
  0x72   :  { %v2635_v18 = vld.sshfl [vmem:[#allocation1 + $0x10] sm:$0xff pattern:$0x75316420]  ;;  %v2637_v19 = vld.sshfl [vmem:[#allocation1 + $0x18] sm:$0xff pattern:$0x75316420] }
  0x73   :  { %482 = vst [vmem:[#allocation1 + $0x11] ss:$2 sm:$0xff] %v2590_v23 }
  0x74   :  { %v484_v20 = vld.sshfl [vmem:[#allocation1 + $0x8] sm:$0xff pattern:$0x75316420]  ;;  %v483_v22 = vld.sshfl [vmem:[#allocation1] sm:$0xff pattern:$0x75316420] }
  0x75   :  { %502 = vst [vmem:[#allocation1] ss:$2 sm:$0xff] %v2580_v13 }
  0x7a   :  { %v485_v24 = vld.sshfl [vmem:[#allocation1 + $0x10] sm:$0xff pattern:$0x75316420]  ;;  %v2642_v25 = vld.sshfl [vmem:[#allocation1 + $0x18] sm:$0xff pattern:$0x75316420] }
  0x7b   :  { %v1998_v26 = vpack.i.bf16 %v485_v24, %v484_v20  ;;  %504 = vst [vmem:[#allocation1 + $0x10] ss:$2 sm:$0xff] %v2582_v15 }
  0x7c   :  { %v505_v27 = vld.sshfl [vmem:[#allocation1] sm:$0xff pattern:$0x75316420]  ;;  %v506_v28 = vld.sshfl [vmem:[#allocation1 + $0x8] sm:$0xff pattern:$0x75316420] }
  0x7d   :  { %1999 = vrot.lane.b32.xlu0 %v1998_v26, %s2504_s2  ;;  %v2003_v29 = vpack.i.bf16 %v506_v28, %v505_v27  ;;  %525 = vst [vmem:[#allocation1 + $0x1] ss:$2 sm:$0xff] %v2588_v21 }
  0x82   :  { %v507_v30 = vld.sshfl [vmem:[#allocation1 + $0x10] sm:$0xff pattern:$0x75316420]  ;;  %v2647_v31 = vld.sshfl [vmem:[#allocation1 + $0x18] sm:$0xff pattern:$0x75316420] }
  0x83   :  { %527 = vst [vmem:[#allocation1 + $0x11] ss:$2 sm:$0xff] %v2590_v23  ;;  %v2008_v32 = vpack.i.bf16 %v483_v22, %v507_v30 }
  0x84   :  { %v528_v33 = vld.sshfl [vmem:[#allocation1] sm:$0xff pattern:$0x75316420]  ;;  %v529_v34 = vld.sshfl [vmem:[#allocation1 + $0x8] sm:$0xff pattern:$0x75316420] }
  0x85   :  { %2004 = vrot.lane.b32.xlu0 %v2003_v29, %s2504_s2  ;;  %2009 = vrot.lane.b32.xlu1 %v2008_v32, %s2504_s2  ;;  %v2013_v35 = vpack.i.bf16 %v529_v34, %v528_v33  ;;  %547 = vst [vmem:[#allocation1] ss:$2 sm:$0xff] %v2563_v2 }
  0x87   :  { %2014 = vrot.lane.b32.xlu2 %v2013_v35, %s2505_s30 }
  0x89   :  { %v2662_v44 = vpop.permute.xlu2 %1939 }
  0x8a   :  { %v2653_v36 = vld.sshfl [vmem:[#allocation1 + $0x10] sm:$0xff pattern:$0x75316420]  ;;  %v2655_v37 = vld.sshfl [vmem:[#allocation1 + $0x18] sm:$0xff pattern:$0x75316420] }
  0x8b   :  { %549 = vst [vmem:[#allocation1 + $0x10] ss:$2 sm:$0xff] %v2565_v3 }
  0x8c   :  { %v550_v38 = vld.sshfl [vmem:[#allocation1] sm:$0xff pattern:$0x75316420]  ;;  %v551_v39 = vld.sshfl [vmem:[#allocation1 + $0x8] sm:$0xff pattern:$0x75316420] }
  0x8d   :  { %v2018_v40 = vpack.i.bf16 %v551_v39, %v550_v38  ;;  %570 = vst [vmem:[#allocation1 + $0x1] ss:$2 sm:$0xff] %v2557_v0 }
  0x8f   :  { %2019 = vrot.lane.b32.xlu0 %v2018_v40, %s2504_s2 }
  0x91   :  { %v1920_v43 = vpop.permute.xlu0 %1919  ;;  %v1945_v8 = vpop.permute.xlu2 %1944 }
  0x92   :  { %v552_v41 = vld.sshfl [vmem:[#allocation1 + $0x10] sm:$0xff pattern:$0x75316420]  ;;  %v553_v42 = vld.sshfl [vmem:[#allocation1 + $0x18] sm:$0xff pattern:$0x75316420]  ;;  %v1922_v45 = vunpack.i.h.bf16 %v1920_v43  ;;  %v1921_v46 = vunpack.i.l.bf16 %v1920_v43  ;;  %v1946_v24 = vunpack.i.l.bf16 %v1945_v8 }
  0x93   :  { %572 = vst [vmem:[#allocation1 + $0x11] ss:$2 sm:$0xff] %v2560_v1 }
  0x94   :  { %v573_v47 = vld.sshfl [vmem:[#allocation1] sm:$0xff pattern:$0x75316420]  ;;  %v574_v48 = vld.sshfl [vmem:[#allocation1 + $0x8] sm:$0xff pattern:$0x75316420]  ;;  %v97_v53 = vsel %vm96_vm1, %v1921_v46, %v1922_v45 }
  0x95   :  { %v2028_v49 = vpack.i.bf16 %v573_v47, %v552_v41  ;;  %592 = vst [vmem:[#allocation1] ss:$2 sm:$0xff] %v2563_v2  ;;  %v264_v57 = vsel %vm263_vm0, %v2567_v4, %v97_v53  ;;  %v1947_v4 = vunpack.i.h.bf16 %v1945_v8 }
  0x97   :  { %2029 = vrot.lane.b32.xlu1 %v2028_v49, %s2504_s2  ;;  %v147_v35 = vsel %vm144_vm2, %v1946_v24, %v1947_v4  ;;  %v1942_v49 = vunpack.i.h.bf16 %v2662_v44 }
  0x99   :  { %v1925_v54 = vpop.permute.xlu0 %1924  ;;  %v2669_v55 = vpop.permute.xlu1 %1929 }
  0x9a   :  { %v576_v50 = vld.sshfl [vmem:[#allocation1 + $0x18] sm:$0xff pattern:$0x75316420]  ;;  %v575_v51 = vld.sshfl [vmem:[#allocation1 + $0x10] sm:$0xff pattern:$0x75316420]  ;;  %v1926_v56 = vunpack.i.l.bf16 %v1925_v54  ;;  %v1927_v9 = vunpack.i.h.bf16 %v1925_v54  ;;  %v1960_v41 = vpop.permute.xlu2 %1959 }
  0x9b   :  { %v2033_v52 = vpack.i.bf16 %v575_v51, %v574_v48  ;;  %594 = vst [vmem:[#allocation1 + $0x10] ss:$2 sm:$0xff] %v2565_v3  ;;  %v2038_v27 = vpack.i.bf16 %v576_v50, %v553_v42  ;;  %v1932_v48 = vunpack.i.h.bf16 %v2669_v55  ;;  %v1962_v51 = vunpack.i.h.bf16 %v1960_v41 }
  0x9c   :  { %v596_v58 = vld.sshfl [vmem:[#allocation1 + $0x8] sm:$0xff pattern:$0x75316420]  ;;  %v98_v59 = vsel %vm96_vm1, %v1922_v45, %v1926_v56  ;;  %v595_v62 = vld.sshfl [vmem:[#allocation1] sm:$0xff pattern:$0x75316420] }
  0x9d   :  { %2034 = vrot.lane.b32.xlu2 %v2033_v52, %s2504_s2  ;;  %v265_v63 = vsel %vm263_vm0, %v2569_v5, %v98_v59  ;;  %776 = vst [vmem:[#allocation1] ss:$2 sm:$0xff] %v2580_v13  ;;  %v267_v5 = vsel %vm263_vm0, %v2574_v7, %v1927_v9  ;;  %v99_v7 = vsel %vm96_vm1, %v1926_v56, %v1927_v9  ;;  %v1961_v52 = vunpack.i.l.bf16 %v1960_v41 }
  0x9e   :  { %v2023_v10 = vpack.i.bf16 %v265_v63, %v264_v57  ;;  %v266_v39 = vsel %vm263_vm0, %v2572_v6, %v99_v7  ;;  %v146_v63 = vsel %vm144_vm2, %v1942_v49, %v1946_v24 }
  0x9f   :  { %601 = vrot.lane.b32.xlu1 %v596_v58, %s2505_s30  ;;  %v193_v8 = vsel %vm169_vm3, %v1961_v52, %v1962_v51 }
  0xa0   :  { %2024 = vrot.lane.b32.xlu0 %v2023_v10, %s2507_s7 }
  0xa1   :  { %v1935_v17 = vpop.permute.xlu1 %1934 }
  0xa2   :  { %v597_v14 = vld.sshfl [vmem:[#allocation1 + $0x10] sm:$0xff pattern:$0x75316420]  ;;  %v598_v16 = vld.sshfl [vmem:[#allocation1 + $0x18] sm:$0xff pattern:$0x75316420]  ;;  %v1937_v20 = vunpack.i.h.bf16 %v1935_v17  ;;  %v1936_v22 = vunpack.i.l.bf16 %v1935_v17 }
  0xa3   :  { %778 = vst [vmem:[#allocation1 + $0x10] ss:$2 sm:$0xff] %v2582_v15 }
  0xa4   :  { %v271_v26 = vsel %vm263_vm0, %v1937_v20, %v1947_v4  ;;  %v2684_v28 = vld.sshfl [vmem:[#allocation1] sm:$0xff pattern:$0x75316420]  ;;  %v2686_v29 = vld.sshfl [vmem:[#allocation1 + $0x8] sm:$0xff pattern:$0x75316420]  ;;  %v121_v34 = vsel %vm96_vm1, %v1936_v22, %v1937_v20  ;;  %v120_v59 = vsel %vm96_vm1, %v1932_v48, %v1936_v22 }
  0xa5   :  { %603 = vrot.lane.b32.xlu2 %v597_v14, %s2505_s30  ;;  %v2043_v30 = vpack.i.bf16 %v267_v5, %v271_v26  ;;  %788 = vst [vmem:[#allocation1 + $0x1] ss:$2 sm:$0xff] %v2588_v21  ;;  %v270_v40 = vsel %vm263_vm0, %v121_v34, %v147_v35  ;;  %v269_v26 = vsel %vm263_vm0, %v120_v59, %v146_v63 }
  0xa6   :  { %v2048_v45 = vpack.i.bf16 %v266_v39, %v270_v40 }
  0xa7   :  { %2044 = vrot.lane.b32.xlu1 %v2043_v30, %s2507_s7 }
  0xa8   :  { %2039 = vrot.lane.b32.xlu0 %v2038_v27, %s2504_s2 }
  0xa9   :  { %v1950_v38 = vpop.permute.xlu0 %1949 }
  0xaa   :  { %v2689_v32 = vld.sshfl [vmem:[#allocation1 + $0x10] sm:$0xff pattern:$0x75316420]  ;;  %v2691_v33 = vld.sshfl [vmem:[#allocation1 + $0x18] sm:$0xff pattern:$0x75316420]  ;;  %v1952_v53 = vunpack.i.h.bf16 %v1950_v38  ;;  %v1951_v54 = vunpack.i.l.bf16 %v1950_v38 }
  0xab   :  { %790 = vst [vmem:[#allocation1 + $0x11] ss:$2 sm:$0xff] %v2590_v23  ;;  %v2706_v50 = vpop.permute.xlu1 %1954 }
  0xac   :  { %v791_v42 = vld.sshfl [vmem:[#allocation1] sm:$0xff pattern:$0x75316420]  ;;  %v792_v43 = vld.sshfl [vmem:[#allocation1 + $0x8] sm:$0xff pattern:$0x75316420]  ;;  %v1957_v6 = vunpack.i.h.bf16 %v2706_v50  ;;  %v1956_v56 = vunpack.i.l.bf16 %v2706_v50  ;;  %v170_v14 = vsel %vm169_vm3, %v1951_v54, %v1952_v53 }
  0xad   :  { %605 = vrot.lane.b32.xlu2 %v598_v16, %s2505_s30  ;;  %810 = vst [vmem:[#allocation1] ss:$2 sm:$0xff] %v2580_v13  ;;  %v2053_v58 = vpack.i.bf16 %v792_v43, %v791_v42  ;;  %v272_v30 = vsel %vm263_vm0, %v170_v14, %v193_v8  ;;  %v1975_v42 = vpop.permute.xlu2 %1974 }
  0xae   :  { %v171_v20 = vsel %vm169_vm3, %v1952_v53, %v1956_v56 }
  0xaf   :  { %2049 = vrot.lane.b32.xlu1 %v2048_v45, %s2507_s7 }
  0xb0   :  { %599 = vrot.lane.b32.xlu0 %v595_v62, %s2505_s30  ;;  %v172_v62 = vsel %vm169_vm3, %v1956_v56, %v1957_v6  ;;  %v1976_v56 = vunpack.i.l.bf16 %v1975_v42 }
  0xb2   :  { %v794_v46 = vld.sshfl [vmem:[#allocation1 + $0x18] sm:$0xff pattern:$0x75316420]  ;;  %v793_v47 = vld.sshfl [vmem:[#allocation1 + $0x10] sm:$0xff pattern:$0x75316420] }
  0xb3   :  { %812 = vst [vmem:[#allocation1 + $0x10] ss:$2 sm:$0xff] %v2582_v15  ;;  %v1965_v57 = vpop.permute.xlu0 %1964  ;;  %v2058_v39 = vpack.i.bf16 %v2637_v19, %v794_v46 }
  0xb4   :  { %v1967_v9 = vunpack.i.h.bf16 %v1965_v57  ;;  %v1966_v10 = vunpack.i.l.bf16 %v1965_v57  ;;  %v814_v16 = vld.sshfl [vmem:[#allocation1 + $0x8] sm:$0xff pattern:$0x75316420]  ;;  %v2724_v4 = vld.sshfl [vmem:[#allocation1] sm:$0xff pattern:$0x75316420]  ;;  %v1977_v57 = vunpack.i.h.bf16 %v1975_v42 }
  0xb5   :  { %833 = vst [vmem:[#allocation1 + $0x1] ss:$2 sm:$0xff] %v2557_v0 }
  0xb6   :  { %v195_v17 = vsel %vm169_vm3, %v1966_v10, %v1967_v9  ;;  %v194_v5 = vsel %vm169_vm3, %v1962_v51, %v1966_v10  ;;  %v217_v50 = vsel %vm144_vm2, %v1976_v56, %v1977_v57 }
  0xb7   :  { %2054 = vrot.lane.b32.xlu1 %v2053_v58, %s2503_s0  ;;  %v274_v27 = vsel %vm263_vm0, %v172_v62, %v195_v17  ;;  %v273_v7 = vsel %vm263_vm0, %v171_v20, %v194_v5  ;;  %v275_v5 = vsel %vm263_vm0, %v1957_v6, %v1967_v9 }
  0xb8   :  { %v2068_v34 = vpack.i.bf16 %v274_v27, %v269_v26  ;;  %v2063_v35 = vpack.i.bf16 %v273_v7, %v272_v30 }
  0xb9   :  { %v1970_v38 = vpop.permute.xlu1 %1969 }
  0xba   :  { %v816_v22 = vld.sshfl [vmem:[#allocation1 + $0x18] sm:$0xff pattern:$0x75316420]  ;;  %v815_v24 = vld.sshfl [vmem:[#allocation1 + $0x10] sm:$0xff pattern:$0x75316420]  ;;  %2069 = vrot.lane.b32.xlu2 %v2068_v34, %s2507_s7  ;;  %2064 = vrot.lane.b32.xlu0 %v2063_v35, %s2507_s7  ;;  %v1972_v43 = vunpack.i.h.bf16 %v1970_v38  ;;  %v1971_v45 = vunpack.i.l.bf16 %v1970_v38  ;;  %v1931_v34 = vunpack.i.l.bf16 %v2669_v55  ;;  %v1941_v35 = vunpack.i.l.bf16 %v2662_v44 }
  0xbb   :  { %835 = vst [vmem:[#allocation1 + $0x11] ss:$2 sm:$0xff] %v2560_v1  ;;  %v2078_v51 = vpack.i.bf16 %v816_v22, %v793_v47  ;;  %v2073_v52 = vpack.i.bf16 %v815_v24, %v814_v16 }
  0xbc   :  { %v2739_v40 = vld.sshfl [vmem:[#allocation1] sm:$0xff pattern:$0x75316420]  ;;  %v2741_v41 = vld.sshfl [vmem:[#allocation1 + $0x8] sm:$0xff pattern:$0x75316420]  ;;  %v215_v46 = vsel %vm144_vm2, %v1971_v45, %v1972_v43  ;;  %v216_v63 = vsel %vm144_vm2, %v1972_v43, %v1976_v56  ;;  %v145_v42 = vsel %vm144_vm2, %v1941_v35, %v1942_v49 }
  0xbd   :  { %844 = vst [vmem:[#allocation1] ss:$2 sm:$0xff] %v2563_v2 }
  0xbf   :  { %2059 = vrot.lane.b32.xlu1 %v2058_v39, %s2503_s0  ;;  %v119_v39 = vsel %vm96_vm1, %v1931_v34, %v1932_v48 }
  0xc0   :  { %v268_v56 = vsel %vm263_vm0, %v119_v39, %v145_v42 }
  0xc1   :  { %v1980_v19 = vpop.permute.xlu0 %1979 }
  0xc2   :  { %v2745_v53 = vld.sshfl [vmem:[#allocation1 + $0x10] sm:$0xff pattern:$0x75316420]  ;;  %v2747_v54 = vld.sshfl [vmem:[#allocation1 + $0x18] sm:$0xff pattern:$0x75316420]  ;;  %2079 = vrot.lane.b32.xlu2 %v2078_v51, %s2503_s0  ;;  %2074 = vrot.lane.b32.xlu0 %v2073_v52, %s2503_s0  ;;  %v1982_v58 = vunpack.i.h.bf16 %v1980_v19  ;;  %v1981_v47 = vunpack.i.l.bf16 %v1980_v19  ;;  %v253_v52 = vpop.permute.xlu2 %252 }
  0xc3   :  { %846 = vst [vmem:[#allocation1 + $0x10] ss:$2 sm:$0xff] %v2565_v3  ;;  %v1985_v59 = vpop.permute.xlu1 %1984 }
  0xc4   :  { %v1987_v8 = vunpack.i.h.bf16 %v1985_v59  ;;  %v1986_v10 = vunpack.i.l.bf16 %v1985_v59  ;;  %v238_v62 = vsel %vm169_vm3, %v1981_v47, %v1982_v58  ;;  %v847_v14 = vld.sshfl [vmem:[#allocation1] sm:$0xff pattern:$0x75316420]  ;;  %v848_v16 = vld.sshfl [vmem:[#allocation1 + $0x8] sm:$0xff pattern:$0x75316420] }
  0xc5   :  { %v276_v17 = vsel %vm263_vm0, %v215_v46, %v238_v62  ;;  %867 = vst [vmem:[#allocation1 + $0x1] ss:$2 sm:$0xff] %v2557_v0  ;;  %v2098_v27 = vpack.i.bf16 %v847_v14, %v2635_v18 }
  0xc6   :  { %v239_v20 = vsel %vm169_vm3, %v1982_v58, %v1986_v10  ;;  %v279_v22 = vsel %vm263_vm0, %v1977_v57, %v1987_v8  ;;  %v240_v6 = vsel %vm169_vm3, %v1986_v10, %v1987_v8 }
  0xc7   :  { %v277_v24 = vsel %vm263_vm0, %v216_v63, %v239_v20  ;;  %v2083_v26 = vpack.i.bf16 %v275_v5, %v279_v22  ;;  %v278_v51 = vsel %vm263_vm0, %v217_v50, %v240_v6 }
  0xc8   :  { %v2088_v38 = vpack.i.bf16 %v277_v24, %v276_v17  ;;  %v2093_v58 = vpack.i.bf16 %v268_v56, %v278_v51 }
  0xc9   :  { %v255_v9 = vpop.permute.xlu0 %254 }
  0xca   :  { %v849_v30 = vld.sshfl [vmem:[#allocation1 + $0x10] sm:$0xff pattern:$0x75316420]  ;;  %v850_v7 = vld.sshfl [vmem:[#allocation1 + $0x18] sm:$0xff pattern:$0x75316420]  ;;  %2089 = vrot.lane.b32.xlu1 %v2088_v38, %s2507_s7  ;;  %2084 = vrot.lane.b32.xlu0 %v2083_v26, %s2507_s7  ;;  %v259_v8 = vpop.permute.xlu2 %258 }
  0xcb   :  { %869 = vst [vmem:[#allocation1 + $0x11] ss:$2 sm:$0xff] %v2560_v1  ;;  %2099 = vrot.lane.b32.xlu2 %v2098_v27, %s2503_s0  ;;  %v257_v18 = vpop.permute.xlu1 %256  ;;  %v2103_v46 = vpack.i.bf16 %v849_v30, %v848_v16 }
  0xcc   :  { %v870_v43 = vld.sshfl [vmem:[#allocation1] sm:$0xff pattern:$0x75316420]  ;;  %v871_v45 = vld.sshfl [vmem:[#allocation1 + $0x8] sm:$0xff pattern:$0x75316420]  ;;  %v261_v19 = vsel %vm169_vm3, %v255_v9, %v257_v18  ;;  %v262_v22 = vsel %vm169_vm3, %v257_v18, %v259_v8 }
  0xcd   :  { %889 = vst [vmem:[#allocation1] ss:$2 sm:$0xff] %v2580_v13  ;;  %v2108_v47 = vpack.i.bf16 %v871_v45, %v870_v43 }
  0xd2   :  { %v872_v57 = vld.sshfl [vmem:[#allocation1 + $0x10] sm:$0xff pattern:$0x75316420]  ;;  %v873_v55 = vld.sshfl [vmem:[#allocation1 + $0x18] sm:$0xff pattern:$0x75316420]  ;;  %2094 = vrot.lane.b32.xlu1 %v2093_v58, %s2507_s7  ;;  %330 = vrot.lane.b32.xlu0 %v261_v19, %s2507_s7 }
  0xd3   :  { %891 = vst [vmem:[#allocation1 + $0x10] ss:$2 sm:$0xff] %v2582_v15  ;;  %2104 = vrot.lane.b32.xlu2 %v2103_v46, %s2503_s0  ;;  %v2113_v49 = vpack.i.bf16 %v2724_v4, %v872_v57  ;;  %v2118_v16 = vpack.i.bf16 %v873_v55, %v850_v7  ;;  %v260_v4 = vsel %vm169_vm3, %v253_v52, %v255_v9 }
  0xd4   :  { %v892_v44 = vld.sshfl [vmem:[#allocation1] sm:$0xff pattern:$0x75316420]  ;;  %v893_v48 = vld.sshfl [vmem:[#allocation1 + $0x8] sm:$0xff pattern:$0x75316420] }
  0xd5   :  { %912 = vst [vmem:[#allocation1 + $0x1] ss:$2 sm:$0xff] %v2588_v21  ;;  %v2123_v34 = vpack.i.bf16 %v893_v48, %v892_v44 }
  0xda   :  { %v894_v59 = vld.sshfl [vmem:[#allocation1 + $0x10] sm:$0xff pattern:$0x75316420]  ;;  %v895_v63 = vld.sshfl [vmem:[#allocation1 + $0x18] sm:$0xff pattern:$0x75316420]  ;;  %2114 = vrot.lane.b32.xlu1 %v2113_v49, %s2503_s0  ;;  %2109 = vrot.lane.b32.xlu0 %v2108_v47, %s2503_s0  ;;  %v2795_v17 = vpop.permute.xlu0 %1989 }
  0xdb   :  { %914 = vst [vmem:[#allocation1 + $0x11] ss:$2 sm:$0xff] %v2590_v23  ;;  %334 = vrot.lane.b32.xlu2 %v259_v8, %s2507_s7  ;;  %v2128_v27 = vpack.i.bf16 %v895_v63, %v894_v59 }
  0xdc   :  { %v915_v10 = vld.sshfl [vmem:[#allocation1] sm:$0xff pattern:$0x75316420]  ;;  %v916_v62 = vld.sshfl [vmem:[#allocation1 + $0x8] sm:$0xff pattern:$0x75316420] }
  0xdd   :  { %934 = vst [vmem:[#allocation1] ss:$2 sm:$0xff] %v2580_v13  ;;  %v2133_v14 = vpack.i.bf16 %v915_v10, %v2653_v36 }
  0xe1   :  { %v2801_v24 = vpop.permute.xlu2 %2014  ;;  %v2824_v45 = vpop.permute.xlu1 %1994 }
  0xe2   :  { %2134 = vrot.lane.b32.xlu0 %v2133_v14, %s2505_s30  ;;  %2119 = vrot.lane.b32.xlu1 %v2118_v16, %s2503_s0  ;;  %v917_v20 = vld.sshfl [vmem:[#allocation1 + $0x10] sm:$0xff pattern:$0x75316420]  ;;  %v918_v26 = vld.sshfl [vmem:[#allocation1 + $0x18] sm:$0xff pattern:$0x75316420]  ;;  %v3707_v30 = vunpack.i.h.bf16 %v2801_v24  ;;  %v2016_v7 = vunpack.i.l.bf16 %v2801_v24 }
  0xe3   :  { %328 = vrot.lane.b32.xlu2 %v260_v4, %s2507_s7  ;;  %v2138_v5 = vpack.i.bf16 %v917_v20, %v916_v62  ;;  %936 = vst [vmem:[#allocation1 + $0x10] ss:$2 sm:$0xff] %v2582_v15  ;;  %v2143_v52 = vpack.i.bf16 %v2655_v37, %v918_v26 }
  0xe4   :  { %v937_v35 = vld.sshfl [vmem:[#allocation1] sm:$0xff pattern:$0x75316420]  ;;  %v938_v6 = vld.sshfl [vmem:[#allocation1 + $0x8] sm:$0xff pattern:$0x75316420]  ;;  %v540_v39 = vsel %vm169_vm3, %v2016_v7, %v3707_v30 }
  0xe5   :  { %1118 = vst [vmem:[#allocation1] ss:$2 sm:$0xff] %v2588_v21 }
  0xea   :  { %2139 = vrot.lane.b32.xlu0 %v2138_v5, %s2505_s30  ;;  %v939_v38 = vld.sshfl [vmem:[#allocation1 + $0x10] sm:$0xff pattern:$0x75316420]  ;;  %v940_v50 = vld.sshfl [vmem:[#allocation1 + $0x18] sm:$0xff pattern:$0x75316420]  ;;  %2124 = vrot.lane.b32.xlu1 %v2123_v34, %s2504_s2 }
  0xeb   :  { %332 = vrot.lane.b32.xlu2 %v262_v22, %s2507_s7  ;;  %1120 = vst [vmem:[#allocation1 + $0x10] ss:$2 sm:$0xff] %v2590_v23 }
  0xec   :  { %v2840_v55 = vld.sshfl [vmem:[#allocation1] sm:$0xff pattern:$0x75316420]  ;;  %v2842_v58 = vld.sshfl [vmem:[#allocation1 + $0x8] sm:$0xff pattern:$0x75316420] }
  0xed   :  { %3725 = vst [vmem:[#allocation17_spill] sm:$0xff] %v2840_v55 }
  0xee   :  { %3726 = vst [vmem:[#allocation18_spill] sm:$0xff] %v2842_v58 }
  0xef   :  { %v2806_v36 = vpop.permute.xlu0 %1999  ;;  %1130 = vst [vmem:[#allocation1 + $0x1] ss:$2 sm:$0xff] %v2580_v13 }
  0xf2   :  { %945 = vrot.lane.b32.xlu0 %v939_v38, %s2505_s30  ;;  %v2833_v19 = vld.sshfl [vmem:[#allocation1 + $0x10] sm:$0xff pattern:$0x75316420]  ;;  %v2835_v46 = vld.sshfl [vmem:[#allocation1 + $0x18] sm:$0xff pattern:$0x75316420]  ;;  %941 = vrot.lane.b32.xlu1 %v937_v35, %s2505_s30 }
  0xf3   :  { %2129 = vrot.lane.b32.xlu2 %v2128_v27, %s2504_s2  ;;  %3723 = vst [vmem:[#allocation15_spill] sm:$0xff] %v2833_v19 }
  0xf4   :  { %3724 = vst [vmem:[#allocation16_spill] sm:$0xff] %v2835_v46 }
  0xf5   :  { %1132 = vst [vmem:[#allocation1 + $0x11] ss:$2 sm:$0xff] %v2582_v15 }
  0xf6   :  { %v2856_v47 = vld.sshfl [vmem:[#allocation1] sm:$0xff pattern:$0x75316420]  ;;  %v2858_v59 = vld.sshfl [vmem:[#allocation1 + $0x8] sm:$0xff pattern:$0x75316420] }
  0xf7   :  { %v2811_v18 = vpop.permute.xlu0 %2004  ;;  %v2813_v9 = vpop.permute.xlu2 %2034  ;;  %3729 = vst [vmem:[#allocation21_spill] sm:$0xff] %v2856_v47 }
  0xf8   :  { %v3708_v42 = vunpack.i.h.bf16 %v2811_v18  ;;  %v2006_v43 = vunpack.i.l.bf16 %v2811_v18  ;;  %v2845_v37 = vpop.permute.xlu1 %2009  ;;  %3730 = vst [vmem:[#allocation22_spill] sm:$0xff] %v2858_v59 }
  0xf9   :  { %1141 = vst [vmem:[#allocation1] ss:$2 sm:$0xff] %v2588_v21 }
  0xfa   :  { %v517_v51 = vsel %vm144_vm2, %v2006_v43, %v3708_v42  ;;  %947 = vrot.lane.b32.xlu1 %v940_v50, %s2505_s30 }
  0xfb   :  { %v2831_v56 = vsel %vm263_vm0, %v517_v51, %v540_v39  ;;  %2144 = vrot.lane.b32.xlu2 %v2143_v52, %s2505_s30 }
  0xfc   :  { %v2847_v44 = vld.sshfl [vmem:[#allocation1 + $0x10] sm:$0xff pattern:$0x75316420]  ;;  %v2849_v48 = vld.sshfl [vmem:[#allocation1 + $0x18] sm:$0xff pattern:$0x75316420] }
  0xfd   :  { %3727 = vst [vmem:[#allocation19_spill] sm:$0xff] %v2847_v44 }
  0xfe   :  { %3728 = vst [vmem:[#allocation20_spill] sm:$0xff] %v2849_v48 }
  0xff   :  { %v604_v57 = vpop.permute.xlu2 %603  ;;  %1143 = vst [vmem:[#allocation1 + $0x10] ss:$2 sm:$0xff] %v2590_v23 }
 0x100   :  { %v2870_v16 = vld.sshfl [vmem:[#allocation1 + $0x8] sm:$0xff pattern:$0x75316420]  ;;  %v1144_v4 = vld.sshfl [vmem:[#allocation1] sm:$0xff pattern:$0x75316420] }
 0x101   :  { %v2865_v8 = vpop.permute.xlu0 %2019  ;;  %1164 = vst [vmem:[#allocation1 + $0x1] ss:$2 sm:$0xff] %v2563_v2 }
 0x102   :  { %v2022_v58 = vunpack.i.h.bf16 %v2865_v8 }
 0x103   :  { %943 = vrot.lane.b32.xlu2 %v938_v6, %s2505_s30 }
 0x106   :  { %v1146_v62 = vld.sshfl [vmem:[#allocation1 + $0x10] sm:$0xff pattern:$0x75316420]  ;;  %v1147_v14 = vld.sshfl [vmem:[#allocation1 + $0x18] sm:$0xff pattern:$0x75316420] }
 0x107   :  { %v2851_v49 = vpop.permute.xlu2 %605  ;;  %1166 = vst [vmem:[#allocation1 + $0x11] ss:$2 sm:$0xff] %v2565_v3  ;;  %v2158_v22 = vpack.i.bf16 %v1147_v14, %v1146_v62  ;;  %v1997_v62 = vunpack.i.h.bf16 %v2824_v45  ;;  %v1996_v14 = vunpack.i.l.bf16 %v2824_v45 }
 0x108   :  { %v2862_v63 = vsel %vm169_vm3, %v604_v57, %v2851_v49  ;;  %v2886_v35 = vld.sshfl [vmem:[#allocation1] sm:$0xff pattern:$0x75316420]  ;;  %v2888_v38 = vld.sshfl [vmem:[#allocation1 + $0x8] sm:$0xff pattern:$0x75316420] }
 0x109   :  { %v2867_v10 = vpop.permute.xlu1 %2029  ;;  %2159 = vrot.lane.b32.xlu1 %v2158_v22, %s2503_s0  ;;  %3731 = vst [vmem:[#allocation23_spill] sm:$0xff] %v2886_v35  ;;  %v2012_v22 = vunpack.i.h.bf16 %v2845_v37  ;;  %v472_v48 = vsel %vm96_vm1, %v1996_v14, %v1997_v62 }
 0x10a   :  { %1175 = vst [vmem:[#allocation1] ss:$2 sm:$0xff] %v2557_v0  ;;  %v2001_v0 = vunpack.i.l.bf16 %v2806_v36 }
 0x10c   :  { %v495_v19 = vsel %vm144_vm2, %v2012_v22, %v2001_v0 }
 0x10d   :  { %v614_v14 = vsel %vm263_vm0, %v472_v48, %v495_v19 }
 0x10e   :  { %v2875_v26 = vld.sshfl [vmem:[#allocation1 + $0x10] sm:$0xff pattern:$0x75316420]  ;;  %v2877_v27 = vld.sshfl [vmem:[#allocation1 + $0x18] sm:$0xff pattern:$0x75316420] }
 0x10f   :  { %1177 = vst [vmem:[#allocation1 + $0x10] ss:$2 sm:$0xff] %v2560_v1 }
 0x111   :  { %v602_v20 = vpop.permute.xlu1 %601  ;;  %v2902_v51 = vld.sshfl [vmem:[#allocation1] sm:$0xff pattern:$0x75316420]  ;;  %v2904_v52 = vld.sshfl [vmem:[#allocation1 + $0x8] sm:$0xff pattern:$0x75316420] }
 0x112   :  { %v2873_v5 = vpop.permute.xlu0 %2024  ;;  %v2880_v7 = vsel %vm169_vm3, %v602_v20, %v604_v57  ;;  %3732 = vst [vmem:[#allocation24_spill] sm:$0xff] %v2902_v51 }
 0x113   :  { %1187 = vst [vmem:[#allocation1 + $0x1] ss:$2 sm:$0xff] %v2563_v2  ;;  %v2026_v12 = vunpack.i.l.bf16 %v2873_v5 }
 0x114   :  { %v2883_v34 = vpop.permute.xlu2 %2069 }
 0x115   :  { %v2072_v11 = vunpack.i.h.bf16 %v2883_v34 }
 0x116   :  { %v2895_v39 = vld.sshfl [vmem:[#allocation1 + $0x10] sm:$0xff pattern:$0x75316420]  ;;  %v2897_v43 = vld.sshfl [vmem:[#allocation1 + $0x18] sm:$0xff pattern:$0x75316420] }
 0x117   :  { %1189 = vst [vmem:[#allocation1 + $0x11] ss:$2 sm:$0xff] %v2565_v3  ;;  %v3709_v3 = vunpack.i.h.bf16 %v2806_v36 }
 0x119   :  { %v2891_v50 = vpop.permute.xlu1 %2044  ;;  %v496_v44 = vsel %vm144_vm2, %v2001_v0, %v3709_v3  ;;  %v3710_v0 = vunpack.i.h.bf16 %v2813_v9 }
 0x11a   :  { %v2893_v6 = vpop.permute.xlu0 %2039  ;;  %v1190_v51 = vld.sshfl [vmem:[#allocation1] sm:$0xff pattern:$0x75316420]  ;;  %v2916_v46 = vld.sshfl [vmem:[#allocation1 + $0x8] sm:$0xff pattern:$0x75316420] }
 0x11b   :  { %1209 = vst [vmem:[#allocation1] ss:$2 sm:$0xff] %v2588_v21  ;;  %v2183_v35 = vpack.i.bf16 %v1144_v4, %v1190_v51  ;;  %v3733_v51 = vunpack.i.l.bf16 %v2867_v10 }
 0x11c   :  { %v2900_v1 = vpop.permute.xlu2 %2079 }
 0x11d   :  { %v563_v19 = vsel %vm144_vm2, %v2022_v58, %v3733_v51 }
 0x11e   :  { %v1193_v47 = vld.sshfl [vmem:[#allocation1 + $0x18] sm:$0xff pattern:$0x75316420]  ;;  %v2933_v61 = vld.sshfl [vmem:[#allocation1 + $0x10] sm:$0xff pattern:$0x75316420] }
 0x11f   :  { %1211 = vst [vmem:[#allocation1 + $0x10] ss:$2 sm:$0xff] %v2590_v23 }
 0x121   :  { %v2907_v57 = vpop.permute.xlu1 %2049 }
 0x122   :  { %v600_v30 = vpop.permute.xlu0 %599  ;;  %v2965_v51 = vld.sshfl [vmem:[#allocation1] sm:$0xff pattern:$0x75316420] }
 0x123   :  { %v607_v42 = vsel %vm169_vm3, %v600_v30, %v602_v20  ;;  %v2021_v30 = vunpack.i.l.bf16 %v2865_v8  ;;  %v2036_v8 = vunpack.i.l.bf16 %v2813_v9 }
 0x124   :  { %674 = vrot.lane.b32.xlu1 %v607_v42, %s2506_s6  ;;  %v2032_v42 = vunpack.i.h.bf16 %v2867_v10 }
 0x125   :  { %v2100_v2 = vpop.permute.xlu2 %2099  ;;  %v562_v20 = vsel %vm144_vm2, %v2021_v30, %v2022_v58  ;;  %v2082_v58 = vunpack.i.h.bf16 %v2900_v1 }
 0x126   :  { %v2101_v45 = vunpack.i.l.bf16 %v2100_v2  ;;  %v585_v4 = vsel %vm144_vm2, %v2032_v42, %v2036_v8 }
 0x127   :  { %v622_v42 = vsel %vm263_vm0, %v562_v20, %v585_v4 }
 0x128   :  { %v473_v59 = vsel %vm96_vm1, %v1997_v62, %v2101_v45  ;;  %v2102_v62 = vunpack.i.h.bf16 %v2100_v2  ;;  %v2967_v2 = vld.sshfl [vmem:[#allocation1 + $0x10] sm:$0xff pattern:$0x75316420] }
 0x129   :  { %v2929_v55 = vpop.permute.xlu1 %2054  ;;  %v615_v22 = vsel %vm263_vm0, %v473_v59, %v496_v44  ;;  %v586_v59 = vsel %vm144_vm2, %v2036_v8, %v3710_v0  ;;  %v3713_v8 = vunpack.i.l.bf16 %v2900_v1 }
 0x12a   :  { %v2148_v3 = vpack.i.bf16 %v615_v22, %v614_v14  ;;  %v623_v14 = vsel %vm263_vm0, %v563_v19, %v586_v59  ;;  %v2972_v59 = vld.sshfl [vmem:[#allocation1 + $0x18] sm:$0xff pattern:$0x75316420] }
 0x12b   :  { %v2163_v19 = vpack.i.bf16 %v623_v14, %v622_v42  ;;  %1234 = vst [vmem:[#allocation1 + $0x11] ss:$2 sm:$0xff] %v2582_v15 }
 0x12c   :  { %2149 = vrot.lane.b32.xlu0 %v2148_v3, %s2506_s6  ;;  %v2944_v44 = vpop.permute.xlu0 %2064  ;;  %2184 = vrot.lane.b32.xlu1 %v2183_v35, %s2503_s0  ;;  %v2961_v35 = vld.sshfl [vmem:[#allocation1 + $0x8] sm:$0xff pattern:$0x75316420] }
 0x12d   :  { %v2947_v48 = vpop.permute.xlu2 %2104  ;;  %1232 = vst [vmem:[#allocation1 + $0x1] ss:$2 sm:$0xff] %v2580_v13  ;;  %v2993_v13 = vsel %vm263_vm0, %v2082_v58, %v2747_v54 }
 0x12e   :  { %v3711_v30 = vunpack.i.l.bf16 %v2947_v48  ;;  %3735 = vst [vmem:[#allocation26_spill] sm:$0xff] %v2993_v13 }
 0x130   :  { %v2959_v3 = vsel %vm96_vm1, %v2102_v62, %v3711_v30 }
 0x131   :  { %v2963_v22 = vpop.permute.xlu1 %2059 }
 0x132   :  { %v3712_v20 = vunpack.i.h.bf16 %v2963_v22  ;;  %v2061_v4 = vunpack.i.l.bf16 %v2963_v22 }
 0x134   :  { %v2979_v62 = vsel %vm96_vm1, %v2101_v45, %v3712_v20  ;;  %v805_v0 = vsel %vm96_vm1, %v3713_v8, %v2061_v4  ;;  %2164 = vrot.lane.b32.xlu0 %v2163_v19, %s2506_s6  ;;  %v2985_v30 = vpop.permute.xlu0 %2074  ;;  %v2989_v42 = vsel %vm263_vm0, %v2691_v33, %v2061_v4 }
 0x135   :  { %3734 = vst [vmem:[#allocation25_spill] sm:$0xff] %v2989_v42  ;;  %v3716_v15 = vunpack.i.h.bf16 %v2985_v30  ;;  %v2996_v45 = vpop.permute.xlu2 %334  ;;  %v3002_v19 = vsel %vm263_vm0, %v2689_v32, %v805_v0  ;;  %v2178_v32 = vpack.i.bf16 %v2870_v16, %v1193_v47  ;;  %v3018_v42 = vld.sshfl [vmem:[#allocation1 + $0x8] sm:$0xff pattern:$0x75316420]  ;;  %v2066_v47 = vunpack.i.l.bf16 %v2944_v44 }
 0x136   :  { %3736 = vst [vmem:[#allocation27_spill] sm:$0xff] %v3002_v19 }
 0x137   :  { %v827_v33 = vsel %vm96_vm1, %v3716_v15, %v2082_v58  ;;  %v3020_v58 = vld.sshfl [vmem:[#allocation1] sm:$0xff pattern:$0x75316420] }
 0x138   :  { %v3009_v4 = vsel %vm263_vm0, %v827_v33, %v2745_v53  ;;  %1254 = vst [vmem:[#allocation1] ss:$2 sm:$0xff] %v2588_v21  ;;  %v2057_v53 = vunpack.i.h.bf16 %v2929_v55  ;;  %v2056_v33 = vunpack.i.l.bf16 %v2929_v55  ;;  %v2027_v21 = vunpack.i.h.bf16 %v2873_v5 }
 0x139   :  { %3737 = vst [vmem:[#allocation28_spill] sm:$0xff] %v3009_v4  ;;  %v2188_v5 = vpack.i.bf16 %v2961_v35, %v2647_v31  ;;  %v3739_v35 = vunpack.i.h.bf16 %v2947_v48 }
 0x13c   :  { %680 = vrot.lane.b32.xlu0 %v2851_v49, %s2506_s6  ;;  %v2090_v20 = vpop.permute.xlu1 %2089  ;;  %v3015_v14 = vpop.permute.xlu0 %2084  ;;  %v2067_v49 = vunpack.i.h.bf16 %v2944_v44 }
 0x13d   :  { %v329_v8 = vpop.permute.xlu2 %328  ;;  %v2092_v0 = vunpack.i.h.bf16 %v2090_v20  ;;  %v2091_v13 = vunpack.i.l.bf16 %v2090_v20 }
 0x13f   :  { %v346_v19 = vsel %vm336_vm4, %v2091_v13, %v2092_v0 }
 0x144   :  { %2179 = vrot.lane.b32.xlu0 %v2178_v32, %s2503_s0  ;;  %v2095_v54 = vpop.permute.xlu1 %2094  ;;  %v331_v15 = vpop.permute.xlu0 %330  ;;  %v2051_v32 = vunpack.i.l.bf16 %v2907_v57 }
 0x145   :  { %v2096_v16 = vunpack.i.l.bf16 %v2095_v54  ;;  %v333_v20 = vpop.permute.xlu2 %332  ;;  %v349_v4 = vsel %vm336_vm4, %v329_v8, %v331_v15  ;;  %v2097_v60 = vunpack.i.h.bf16 %v2095_v54  ;;  %v343_v54 = vsel %vm336_vm4, %v2066_v47, %v2067_v49 }
 0x146   :  { %1870 = vmatpush.msk.msra.mxu2 %vm263_vm0, %v349_v4  ;;  %v350_v55 = vsel %vm336_vm4, %v331_v15, %v333_v20  ;;  %v2071_v4 = vunpack.i.l.bf16 %v2883_v34  ;;  %v803_v15 = vsel %vm96_vm1, %v2056_v33, %v2057_v53  ;;  %v3738_v8 = vunpack.i.l.bf16 %v2900_v1 }
 0x147   :  { %1872 = vmatpush.msk.msra.mxu3 %vm263_vm0, %v350_v55  ;;  %v347_v44 = vsel %vm336_vm4, %v2092_v0, %v2096_v16  ;;  %v344_v0 = vsel %vm336_vm4, %v2067_v49, %v2072_v11  ;;  %v337_v55 = vsel %vm336_vm4, %v2026_v12, %v2027_v21  ;;  %v3740_v33 = vunpack.i.l.bf16 %v2947_v48 }
 0x148   :  { %386 = vmatpush.msra.mxu2 %v346_v19  ;;  %v804_v13 = vsel %vm96_vm1, %v2057_v53, %v3738_v8  ;;  %v2076_v19 = vunpack.i.l.bf16 %v2985_v30  ;;  %v340_v31 = vsel %vm336_vm4, %v2097_v60, %v2071_v4  ;;  %v341_v34 = vsel %vm336_vm4, %v2071_v4, %v2051_v32 }
 0x149   :  { %406 = vmatpush.msra.mxu3 %v347_v44  ;;  %v860_v47 = vsel %vm96_vm1, %v3740_v33, %v3739_v35  ;;  %v3741_v53 = vunpack.i.h.bf16 %v2907_v57  ;;  %v952_v60 = vsel %vm263_vm0, %v2684_v28, %v803_v15  ;;  %v2086_v35 = vunpack.i.l.bf16 %v3015_v14 }
 0x14a   :  { %387 = vmatpush.msra.mxu2 %v343_v54 }
 0x14b   :  { %407 = vmatpush.msra.mxu3 %v344_v0  ;;  %v338_v49 = vsel %vm336_vm4, %v2027_v21, %v3741_v53  ;;  %v2087_v0 = vunpack.i.h.bf16 %v3015_v14  ;;  %v348_v14 = vsel %vm336_vm4, %v2096_v16, %v2086_v35  ;;  %v3742_v16 = vunpack.i.h.bf16 %v2985_v30  ;;  %v1237_v30 = vld.sshfl [vmem:[#allocation1 + $0x10] sm:$0xff pattern:$0x75316420] }
 0x14c   :  { %2189 = vrot.lane.b32.xlu0 %v2188_v5, %s2504_s2  ;;  %v2115_v12 = vpop.permute.xlu1 %2114  ;;  %388 = vmatpush.msra.mxu2 %v340_v31  ;;  %v2110_v1 = vpop.permute.xlu0 %2109  ;;  %v351_v5 = vsel %vm336_vm4, %v333_v20, %v2996_v45  ;;  %v953_v31 = vsel %vm263_vm0, %v2686_v29, %v804_v13  ;;  %v2011_v20 = vunpack.i.l.bf16 %v2845_v37  ;;  %v2046_v13 = vunpack.i.l.bf16 %v2891_v50 }
 0x14d   :  { %v2117_v44 = vunpack.i.h.bf16 %v2115_v12  ;;  %v2116_v8 = vunpack.i.l.bf16 %v2115_v12  ;;  %408 = vmatpush.msra.mxu3 %v341_v34  ;;  %v2112_v4 = vunpack.i.h.bf16 %v2110_v1  ;;  %v2111_v54 = vunpack.i.l.bf16 %v2110_v1  ;;  %v3070_v21 = vpop.permute.xlu2 %2129 }
 0x14e   :  { %389 = vmatpush.msra.mxu2 %v337_v55  ;;  %v345_v33 = vsel %vm336_vm4, %v2072_v11, %v2087_v0  ;;  %v2203_v12 = vpack.i.bf16 %v953_v31, %v952_v60  ;;  %v826_v1 = vsel %vm96_vm1, %v2076_v19, %v3742_v16  ;;  %v342_v53 = vsel %vm336_vm4, %v2051_v32, %v2046_v13 }
 0x14f   :  { %v825_v28 = vsel %vm96_vm1, %v2117_v44, %v2076_v19  ;;  %v883_v15 = vsel %vm96_vm1, %v2112_v4, %v2116_v8  ;;  %v882_v34 = vsel %vm96_vm1, %v2111_v54, %v2112_v4  ;;  %409 = vmatpush.msra.mxu3 %v338_v49  ;;  %v2173_v11 = vpack.i.bf16 %v2933_v61, %v2916_v46 }
 0x150   :  { %1874 = vmatpush.msk.msrb.mxu2 %vm263_vm0, %v351_v5  ;;  %v3079_v55 = vsel %vm263_vm0, %v2959_v3, %v882_v34  ;;  %v3082_v45 = vsel %vm263_vm0, %v860_v47, %v883_v15  ;;  %v2047_v3 = vunpack.i.h.bf16 %v2891_v50  ;;  %v3743_v44 = vunpack.i.h.bf16 %v2811_v18 }
 0x151   :  { %v2238_v29 = vpack.i.bf16 %v3082_v45, %v3079_v55  ;;  %v2041_v32 = vunpack.i.l.bf16 %v2893_v6  ;;  %v3744_v54 = vunpack.i.h.bf16 %v2907_v57  ;;  %v3115_v46 = vsel %vm263_vm0, %v826_v1, %v2741_v41 }
 0x152   :  { %426 = vmatpush.msrb.mxu2 %v348_v14  ;;  %v518_v4 = vsel %vm144_vm2, %v3743_v44, %v2011_v20  ;;  %v2042_v0 = vunpack.i.h.bf16 %v2893_v6  ;;  %v3745_v35 = vunpack.i.h.bf16 %v2801_v24  ;;  %v3746_v5 = vunpack.i.h.bf16 %v2947_v48 }
 0x153   :  { %v339_v61 = vsel %vm336_vm4, %v3744_v54, %v2047_v3  ;;  %v2208_v6 = vpack.i.bf16 %v1237_v30, %v3018_v42  ;;  %v2132_v14 = vunpack.i.h.bf16 %v3070_v21  ;;  %v2131_v48 = vunpack.i.l.bf16 %v3070_v21 }
 0x154   :  { %427 = vmatpush.msrb.mxu2 %v345_v33  ;;  %2204 = vrot.lane.b32.xlu0 %v2203_v12, %s2508_s8  ;;  %v3094_v47 = vpop.permute.xlu0 %2134  ;;  %v3097_v49 = vpop.permute.xlu1 %2119  ;;  %v3748_v42 = vunpack.i.h.bf16 %v2813_v9  ;;  %v2198_v1 = vpack.i.bf16 %v2972_v59, %v2967_v2  ;;  %v625_v44 = vsel %vm263_vm0, %v2041_v32, %v2042_v0  ;;  %v2228_v54 = vpack.i.bf16 %v3020_v58, %v2965_v51 }
 0x155   :  { %v2136_v60 = vunpack.i.l.bf16 %v3094_v47  ;;  %v2122_v19 = vunpack.i.h.bf16 %v3097_v49  ;;  %v2121_v50 = vunpack.i.l.bf16 %v3097_v49  ;;  %v3133_v15 = vpop.permute.xlu2 %2144  ;;  %v2137_v16 = vunpack.i.h.bf16 %v3094_v47  ;;  %v3765_v49 = vld [vmem:[#allocation20_spill] sm:$0xff] }
 0x156   :  { %428 = vmatpush.msrb.mxu2 %v342_v53  ;;  %v587_v12 = vsel %vm144_vm2, %v3748_v42, %v2042_v0 }
 0x157   :  { %v541_v18 = vsel %vm169_vm3, %v3745_v35, %v2136_v60  ;;  %v861_v57 = vsel %vm96_vm1, %v3746_v5, %v2121_v50  ;;  %v884_v41 = vsel %vm96_vm1, %v2116_v8, %v2122_v19  ;;  %v3747_v8 = vunpack.i.l.bf16 %v2867_v10 }
 0x158   :  { %429 = vmatpush.msrb.mxu2 %v339_v61  ;;  %v619_v31 = vsel %vm263_vm0, %v518_v4, %v541_v18  ;;  %v3136_v24 = vsel %vm263_vm0, %v861_v57, %v884_v41  ;;  %v906_v10 = vsel %vm144_vm2, %v2131_v48, %v2132_v14  ;;  %v3162_v4 = vsel %vm263_vm0, %v825_v28, %v2739_v40  ;;  %v3176_v40 = vld.sshfl [vmem:[#allocation1 + $0x18] sm:$0xff pattern:$0x75316420]  ;;  %v1258_v57 = vld.sshfl [vmem:[#allocation1 + $0x8] sm:$0xff pattern:$0x75316420] }
 0x159   :  { %v2153_v34 = vpack.i.bf16 %v619_v31, %v2831_v56  ;;  %v2243_v13 = vpack.i.bf16 %v3136_v24, %v3115_v46  ;;  %v564_v33 = vsel %vm144_vm2, %v3747_v8, %v2041_v32  ;;  %v2146_v56 = vunpack.i.l.bf16 %v3133_v15  ;;  %1256 = vst [vmem:[#allocation1 + $0x10] ss:$2 sm:$0xff] %v2590_v23 }
 0x15a   :  { %v624_v30 = vsel %vm263_vm0, %v564_v33, %v587_v12 }
 0x15b   :  { %2154 = vrot.lane.b32.xlu2 %v2153_v34, %s2506_s6  ;;  %v2168_v35 = vpack.i.bf16 %v625_v44, %v624_v30  ;;  %v1257_v34 = vld.sshfl [vmem:[#allocation1] sm:$0xff pattern:$0x75316420] }
 0x15c   :  { %2209 = vrot.lane.b32.xlu0 %v2208_v6, %s2504_s2  ;;  %v2140_v3 = vpop.permute.xlu0 %2139  ;;  %v2125_v28 = vpop.permute.xlu1 %2124 }
 0x15d   :  { %v2142_v53 = vunpack.i.h.bf16 %v2140_v3  ;;  %v2141_v9 = vunpack.i.l.bf16 %v2140_v3  ;;  %v2127_v0 = vunpack.i.h.bf16 %v2125_v28  ;;  %v2126_v18 = vunpack.i.l.bf16 %v2125_v28  ;;  %v3209_v55 = vpop.permute.xlu2 %943 }
 0x15f   :  { %v929_v2 = vsel %vm169_vm3, %v2142_v53, %v2146_v56  ;;  %v927_v59 = vsel %vm169_vm3, %v2137_v16, %v2141_v9  ;;  %v928_v51 = vsel %vm169_vm3, %v2141_v9, %v2142_v53  ;;  %v905_v58 = vsel %vm144_vm2, %v2127_v0, %v2131_v48 }
 0x160   :  { %v3171_v61 = vsel %vm263_vm0, %v906_v10, %v929_v2  ;;  %v904_v5 = vsel %vm144_vm2, %v2126_v18, %v2127_v0  ;;  %v3187_v31 = vsel %vm263_vm0, %v905_v58, %v928_v51  ;;  %v1260_v6 = vld.sshfl [vmem:[#allocation1 + $0x18] sm:$0xff pattern:$0x75316420] }
 0x161   :  { %v2253_v32 = vpack.i.bf16 %v3162_v4, %v3171_v61  ;;  %v3184_v41 = vsel %vm263_vm0, %v904_v5, %v927_v59  ;;  %v3758_v4 = vld [vmem:[#allocation21_spill] sm:$0xff] }
 0x162   :  { %v2248_v23 = vpack.i.bf16 %v3187_v31, %v3184_v41  ;;  %v3759_v61 = vld [vmem:[#allocation17_spill] sm:$0xff]  ;;  %v3760_v31 = vld [vmem:[#allocation23_spill] sm:$0xff] }
 0x163   :  { %2169 = vrot.lane.b32.xlu2 %v2168_v35, %s2506_s6 }
 0x164   :  { %2229 = vrot.lane.b32.xlu0 %v2228_v54, %s2504_s2  ;;  %v946_v48 = vpop.permute.xlu0 %945  ;;  %v2147_v54 = vunpack.i.h.bf16 %v3133_v15 }
 0x165   :  { %v950_v45 = vsel %vm169_vm3, %v3209_v55, %v946_v48 }
 0x16b   :  { %676 = vrot.lane.b32.xlu2 %v2880_v7, %s2506_s6  ;;  %v3203_v7 = vpop.permute.xlu1 %941 }
 0x16c   :  { %1263 = vrot.lane.b32.xlu0 %v1258_v57, %s2505_s30 }
 0x173   :  { %678 = vrot.lane.b32.xlu2 %v2862_v63, %s2506_s6  ;;  %v948_v8 = vpop.permute.xlu1 %947 }
 0x174   :  { %2239 = vrot.lane.b32.xlu0 %v2238_v29, %s2508_s8 }
 0x17b   :  { %2174 = vrot.lane.b32.xlu2 %v2173_v11, %s2503_s0  ;;  %v951_v11 = vsel %vm169_vm3, %v946_v48, %v948_v8  ;;  %v3216_v42 = vpop.permute.xlu1 %2159 }
 0x17c   :  { %v2162_v12 = vunpack.i.h.bf16 %v3216_v42  ;;  %v2161_v16 = vunpack.i.l.bf16 %v3216_v42 }
 0x183   :  { %2199 = vrot.lane.b32.xlu2 %v2198_v1, %s2504_s2  ;;  %v1158_v1 = vsel %vm96_vm1, %v2161_v16, %v2162_v12 }
 0x184   :  { %v1278_v30 = vsel %vm263_vm0, %v1158_v1, %v2875_v26  ;;  %v542_v26 = vsel %vm169_vm3, %v2136_v60, %v2147_v54 }
 0x18b   :  { %1267 = vrot.lane.b32.xlu2 %v1260_v6, %s2505_s30 }
 0x193   :  { %1261 = vrot.lane.b32.xlu2 %v1257_v34, %s2505_s30 }
 0x196   :  { %v675_v6 = vpop.permute.xlu1 %674 }
 0x19b   :  { %1022 = vrot.lane.b32.xlu2 %v948_v8, %s2508_s8 }
 0x19e   :  { %v3207_v63 = vpop.permute.xlu0 %2149 }
 0x19f   :  { %v2151_v8 = vunpack.i.l.bf16 %v3207_v63 }
 0x1a3   :  { %1018 = vrot.lane.b32.xlu2 %v950_v45, %s2508_s8 }
 0x1a6   :  { %v2165_v29 = vpop.permute.xlu0 %2164 }
 0x1a7   :  { %v2167_v5 = vunpack.i.h.bf16 %v2165_v29  ;;  %v2166_v57 = vunpack.i.l.bf16 %v2165_v29  ;;  %v2213_v29 = vpack.i.bf16 %v2642_v25, %v3176_v40 }
 0x1a9   :  { %v692_v45 = vsel %vm682_vm5, %v2166_v57, %v2167_v5 }
 0x1ab   :  { %1020 = vrot.lane.b32.xlu2 %v951_v11, %s2508_s8  ;;  %v1992_v11 = vunpack.i.h.bf16 %v2795_v17 }
 0x1ae   :  { %v681_v33 = vpop.permute.xlu0 %680 }
 0x1b5   :  { %v3223_v3 = vpop.permute.xlu2 %2154 }
 0x1b6   :  { %v3225_v10 = vpop.permute.xlu0 %2179  ;;  %v2157_v47 = vunpack.i.h.bf16 %v3223_v3  ;;  %v2156_v60 = vunpack.i.l.bf16 %v3223_v3 }
 0x1b7   :  { %v2182_v53 = vunpack.i.h.bf16 %v3225_v10  ;;  %v2181_v9 = vunpack.i.l.bf16 %v3225_v10 }
 0x1b8   :  { %v689_v1 = vsel %vm682_vm5, %v2156_v60, %v2157_v47 }
 0x1b9   :  { %v3234_v44 = vsel %vm96_vm1, %v2182_v53, %v2161_v16  ;;  %v1283_v2 = vsel %vm263_vm0, %v2897_v43, %v2181_v9  ;;  %v1991_v16 = vunpack.i.l.bf16 %v2795_v17 }
 0x1ba   :  { %v2258_v59 = vpack.i.bf16 %v1283_v2, %v1278_v30  ;;  %v1277_v3 = vsel %vm263_vm0, %v3234_v44, %v2888_v38 }
 0x1bb   :  { %v683_v40 = vsel %vm682_vm5, %v1991_v16, %v1992_v11 }
 0x1bc   :  { %2259 = vrot.lane.b32.xlu0 %v2258_v59, %s2509_s9 }
 0x1bd   :  { %v2170_v35 = vpop.permute.xlu2 %2169 }
 0x1be   :  { %v3240_v28 = vpop.permute.xlu0 %2189  ;;  %v2171_v30 = vunpack.i.l.bf16 %v2170_v35  ;;  %v2172_v59 = vunpack.i.h.bf16 %v2170_v35 }
 0x1bf   :  { %v2191_v0 = vunpack.i.l.bf16 %v3240_v28 }
 0x1c0   :  { %v693_v35 = vsel %vm682_vm5, %v2167_v5, %v2171_v30 }
 0x1c1   :  { %v519_v18 = vsel %vm144_vm2, %v2011_v20, %v2191_v0  ;;  %v621_v43 = vsel %vm263_vm0, %v2191_v0, %v2147_v54  ;;  %v2152_v20 = vunpack.i.h.bf16 %v3207_v63 }
 0x1c2   :  { %v620_v51 = vsel %vm263_vm0, %v519_v18, %v542_v26  ;;  %v694_v18 = vsel %vm682_vm5, %v2171_v30, %v2172_v59 }
 0x1c3   :  { %v2193_v58 = vpack.i.bf16 %v621_v43, %v620_v51  ;;  %v686_v2 = vsel %vm682_vm5, %v2151_v8, %v2152_v20  ;;  %v3297_v8 = vsel %vm263_vm0, %v2162_v12, %v2877_v27 }
 0x1c5   :  { %2194 = vrot.lane.b32.xlu1 %v2193_v58, %s2506_s6  ;;  %v677_v34 = vpop.permute.xlu2 %676 }
 0x1c6   :  { %v3254_v48 = vpop.permute.xlu0 %2204  ;;  %v695_v37 = vsel %vm682_vm5, %v675_v6, %v677_v34  ;;  %v2192_v6 = vunpack.i.h.bf16 %v3240_v28 }
 0x1c7   :  { %1876 = vmatpush.msk.msrb.mxu3 %vm263_vm0, %v695_v37 }
 0x1c9   :  { %728 = vmatpush.msrb.mxu3 %v692_v45 }
 0x1cb   :  { %729 = vmatpush.msrb.mxu3 %v689_v1 }
 0x1cd   :  { %2214 = vrot.lane.b32.xlu1 %v2213_v29, %s2504_s2  ;;  %v679_v54 = vpop.permute.xlu2 %678  ;;  %730 = vmatpush.msrb.mxu3 %v686_v2 }
 0x1ce   :  { %v3272_v25 = vpop.permute.xlu0 %2209  ;;  %v696_v0 = vsel %vm682_vm5, %v677_v34, %v679_v54  ;;  %v697_v26 = vsel %vm682_vm5, %v679_v54, %v681_v33 }
 0x1cf   :  { %731 = vmatpush.msrb.mxu3 %v683_v40  ;;  %1878 = vmatpush.msk.msra.mxu0 %vm263_vm0, %v696_v0  ;;  %v2211_v43 = vunpack.i.l.bf16 %v3272_v25 }
 0x1d0   :  { %1880 = vmatpush.msk.msra.mxu1 %vm263_vm0, %v697_v26 }
 0x1d1   :  { %748 = vmatpush.msra.mxu0 %v693_v35  ;;  %v3335_v35 = vpop.permute.xlu1 %2184 }
 0x1d2   :  { %768 = vmatpush.msra.mxu1 %v694_v18  ;;  %v2187_v46 = vunpack.i.h.bf16 %v3335_v35 }
 0x1d4   :  { %v1156_v41 = vsel %vm96_vm1, %v2187_v46, %v2182_v53 }
 0x1d5   :  { %v3284_v51 = vpop.permute.xlu2 %2174 }
 0x1d6   :  { %v2177_v58 = vunpack.i.h.bf16 %v3284_v51  ;;  %v2176_v57 = vunpack.i.l.bf16 %v3284_v51  ;;  %v2230_v33 = vpop.permute.xlu0 %2229 }
 0x1d7   :  { %v2232_v34 = vunpack.i.h.bf16 %v2230_v33  ;;  %v2231_v60 = vunpack.i.l.bf16 %v2230_v33 }
 0x1d8   :  { %v1204_v37 = vsel %vm96_vm1, %v2177_v58, %v2181_v9  ;;  %v1203_v5 = vsel %vm96_vm1, %v2176_v57, %v2177_v58 }
 0x1d9   :  { %v1247_v45 = vsel %vm144_vm2, %v2232_v34, %v2211_v43  ;;  %v1224_v29 = vsel %vm144_vm2, %v2231_v60, %v2192_v6  ;;  %v1281_v28 = vsel %vm263_vm0, %v2904_v52, %v1203_v5  ;;  %v1282_v9 = vsel %vm263_vm0, %v2895_v39, %v1204_v37  ;;  %v3317_v52 = vld [vmem:[%s3702_s1] sm:$0xff] }
 0x1da   :  { %v2263_v16 = vpack.i.bf16 %v1282_v9, %v1281_v28  ;;  %v3306_v1 = vsel %vm263_vm0, %v1224_v29, %v1247_v45  ;;  %1873 = vmatmul.msk.f32.vlgmr.msra.gmra.mxu3 %vm364_vm6, %v3317_v52  ;;  %1871 = vmatmul.msk.f32.vlgmr.msra.gmra.mxu2 %vm364_vm6, %v3317_v52  ;;  %v2212_v60 = vunpack.i.h.bf16 %v3272_v25 }
 0x1db   :  { %v2288_v42 = vpack.i.bf16 %v3306_v1, %v3297_v8  ;;  %v3750_v1 = vunpack.i.h.bf16 %v2963_v22  ;;  %v3752_v22 = vld [vmem:[#allocation11_spill] sm:$0xff] }
 0x1dc   :  { %2264 = vrot.lane.b32.xlu2 %v2263_v16, %s2509_s9  ;;  %v1248_v8 = vsel %vm144_vm2, %v2211_v43, %v2212_v60 }
 0x1dd   :  { %v2200_v27 = vpop.permute.xlu2 %2199 }
 0x1de   :  { %v2201_v12 = vunpack.i.l.bf16 %v2200_v27  ;;  %v2202_v37 = vunpack.i.h.bf16 %v2200_v27  ;;  %v1264_v24 = vpop.permute.xlu0 %1263 }
 0x1e0   :  { %v1225_v30 = vsel %vm144_vm2, %v2192_v6, %v2201_v12  ;;  %v1226_v45 = vsel %vm144_vm2, %v2201_v12, %v2202_v37 }
 0x1e2   :  { %1875 = vmatmul.msk.f32.vlgmr.msrb.gmra.mxu2 %vm364_vm6, %v3317_v52  ;;  %1877 = vmatmul.msk.f32.vlgmr.msrb.gmra.mxu3 %vm364_vm6, %v3317_v52 }
 0x1e5   :  { %v3312_v2 = vpop.permute.xlu2 %1267 }
 0x1e6   :  { %v2240_v51 = vpop.permute.xlu0 %2239 }
 0x1ed   :  { %v1262_v39 = vpop.permute.xlu2 %1261 }
 0x1f5   :  { %v1023_v59 = vpop.permute.xlu2 %1022 }
 0x1fd   :  { %v3327_v54 = vpop.permute.xlu2 %1018 }
 0x205   :  { %v1021_v40 = vpop.permute.xlu2 %1020 }
 0x206   :  { %v1038_v0 = vsel %vm1024_vm7, %v3327_v54, %v1021_v40  ;;  %v3332_v26 = vsel %vm1024_vm7, %v1021_v40, %v1023_v59  ;;  %v1285_v59 = vsel %vm263_vm0, %v1225_v30, %v1248_v8  ;;  %v3751_v40 = vld [vmem:[#allocation13_spill] sm:$0xff]  ;;  %v3755_v30 = vld [vmem:[#allocation27_spill] sm:$0xff] }
 0x207   :  { %1884 = vmatpush.msk.msra.mxu3 %vm263_vm0, %v1038_v0  ;;  %v612_v0 = vsel %vm263_vm0, %v3752_v22, %v3751_v40 }
 0x237   :  { %v2195_v18 = vpop.permute.xlu1 %2194 }
 0x238   :  { %v2197_v58 = vunpack.i.h.bf16 %v2195_v18  ;;  %v2196_v33 = vunpack.i.l.bf16 %v2195_v18  ;;  %v3753_v18 = vld [vmem:[#allocation14_spill] sm:$0xff] }
 0x23a   :  { %v690_v6 = vsel %vm682_vm5, %v2157_v47, %v2196_v33  ;;  %v691_v34 = vsel %vm682_vm5, %v2196_v33, %v2197_v58  ;;  %v3749_v47 = vunpack.i.h.bf16 %v2806_v36  ;;  %v3754_v58 = vld [vmem:[#allocation12_spill] sm:$0xff] }
 0x23b   :  { %749 = vmatpush.msra.mxu0 %v690_v6  ;;  %769 = vmatpush.msra.mxu1 %v691_v34  ;;  %v3756_v6 = vld [vmem:[#allocation28_spill] sm:$0xff] }
 0x23c   :  { %v3757_v34 = vpack.i.bf16 %v3755_v30, %v3756_v6 }
 0x23f   :  { %v2215_v5 = vpop.permute.xlu1 %2214 }
 0x240   :  { %v2217_v29 = vunpack.i.h.bf16 %v2215_v5  ;;  %v2216_v28 = vunpack.i.l.bf16 %v2215_v5 }
 0x242   :  { %v497_v9 = vsel %vm144_vm2, %v3749_v47, %v2217_v29  ;;  %v1249_v16 = vsel %vm144_vm2, %v2212_v60, %v2216_v28  ;;  %v1287_v25 = vsel %vm263_vm0, %v2202_v37, %v2216_v28  ;;  %v617_v43 = vsel %vm263_vm0, %v3750_v1, %v2217_v29  ;;  %v1259_v60 = vld.sshfl [vmem:[#allocation1 + $0x10] sm:$0xff pattern:$0x75316420] }
 0x243   :  { %v2268_v27 = vpack.i.bf16 %v1277_v3, %v1287_v25  ;;  %v616_v12 = vsel %vm263_vm0, %v2979_v62, %v497_v9  ;;  %v1286_v38 = vsel %vm263_vm0, %v1226_v45, %v1249_v16  ;;  %v613_v62 = vsel %vm263_vm0, %v3754_v58, %v3753_v18  ;;  %v3761_v3 = vld [vmem:[#allocation22_spill] sm:$0xff]  ;;  %v3763_v9 = vld [vmem:[#allocation19_spill] sm:$0xff] }
 0x244   :  { %v2218_v44 = vpack.i.bf16 %v617_v43, %v616_v12  ;;  %v2273_v36 = vpack.i.bf16 %v1286_v38, %v1285_v59  ;;  %v2223_v33 = vpack.i.bf16 %v613_v62, %v612_v0  ;;  %v949_v37 = vsel %vm169_vm3, %v3203_v7, %v3209_v55  ;;  %v3764_v16 = vld [vmem:[#allocation15_spill] sm:$0xff] }
 0x245   :  { %2269 = vrot.lane.b32.xlu0 %v2268_v27, %s2509_s9  ;;  %v1274_v25 = vsel %vm263_vm0, %v3764_v16, %v3763_v9  ;;  %v967_v1 = vsel %vm263_vm0, %v2132_v14, %v2146_v56  ;;  %v2186_v43 = vunpack.i.l.bf16 %v3335_v35  ;;  %v3768_v35 = vld [vmem:[#allocation25_spill] sm:$0xff]  ;;  %v2242_v18 = vunpack.i.h.bf16 %v2240_v51  ;;  %v52_v9 = vld [vmem:[%s3705_s4] sm:$0x7] }
 0x246   :  { %2219 = vrot.lane.b32.xlu1 %v2218_v44, %s2506_s6  ;;  %2274 = vrot.lane.b32.xlu2 %v2273_v36, %s2509_s9  ;;  %v3769_v44 = vld [vmem:[#allocation26_spill] sm:$0xff] }
 0x247   :  { %v1202_v38 = vsel %vm96_vm1, %v2186_v43, %v2176_v57  ;;  %v3770_v36 = vpack.i.bf16 %v3768_v35, %v3769_v44  ;;  %v3512_v43 = vperm.slane %v52_v9, 1 }
 0x24d   :  { %1342 = vrot.lane.b32.xlu0 %v3312_v2, %s2509_s9 }
 0x24e   :  { %2224 = vrot.lane.b32.xlu1 %v2223_v33, %s2506_s6 }
 0x256   :  { %2234 = vrot.lane.b32.xlu1 %v3757_v34, %s2508_s8  ;;  %v2207_v34 = vunpack.i.h.bf16 %v3254_v48 }
 0x25d   :  { %v3504_v16 = vpop.f32.mrf.mxu2 }
 0x25e   :  { %1265 = vrot.lane.b32.xlu1 %v1259_v60, %s2505_s30 }
 0x266   :  { %2244 = vrot.lane.b32.xlu1 %v2243_v13, %s2508_s8  ;;  %v1269_v13 = vsel %vm169_vm3, %v1262_v39, %v1264_v24 }
 0x26e   :  { %2249 = vrot.lane.b32.xlu1 %v2248_v23, %s2508_s8  ;;  %v1276_v23 = vsel %vm263_vm0, %v1156_v41, %v3760_v31 }
 0x276   :  { %2254 = vrot.lane.b32.xlu1 %v2253_v32, %s2508_s8  ;;  %v1272_v32 = vsel %vm263_vm0, %v3759_v61, %v3758_v4 }
 0x277   :  { %v2303_v7 = vpack.i.bf16 %v1272_v32, %v1276_v23  ;;  %v2206_v32 = vunpack.i.l.bf16 %v3254_v48 }
 0x279   :  { %v1025_v23 = vsel %vm1024_vm7, %v2206_v32, %v2207_v34 }
 0x27e   :  { %1016 = vrot.lane.b32.xlu1 %v949_v37, %s2508_s8 }
 0x286   :  { %2289 = vrot.lane.b32.xlu1 %v2288_v42, %s2509_s9 }
 0x28e   :  { %1336 = vrot.lane.b32.xlu1 %v1269_v13, %s2509_s9 }
 0x296   :  { %2304 = vrot.lane.b32.xlu1 %v2303_v7, %s2509_s9  ;;  %v3485_v7 = vpop.permute.xlu2 %2264 }
 0x2b8   :  { %v2220_v55 = vpop.permute.xlu1 %2219 }
 0x2b9   :  { %v2222_v42 = vunpack.i.h.bf16 %v2220_v55  ;;  %v2221_v5 = vunpack.i.l.bf16 %v2220_v55 }
 0x2bb   :  { %v687_v10 = vsel %vm682_vm5, %v2152_v20, %v2221_v5  ;;  %v688_v53 = vsel %vm682_vm5, %v2221_v5, %v2222_v42  ;;  %v2275_v42 = vpop.permute.xlu2 %2274  ;;  %v3489_v5 = vpop.permute.xlu0 %2259 }
 0x2bc   :  { %750 = vmatpush.msra.mxu0 %v687_v10  ;;  %770 = vmatpush.msra.mxu1 %v688_v53 }
 0x2c0   :  { %v2225_v39 = vpop.permute.xlu1 %2224 }
 0x2c1   :  { %v2227_v8 = vunpack.i.h.bf16 %v2225_v39  ;;  %v2226_v45 = vunpack.i.l.bf16 %v2225_v39  ;;  %v2276_v39 = vunpack.i.l.bf16 %v2275_v42 }
 0x2c3   :  { %v684_v29 = vsel %vm682_vm5, %v1992_v11, %v2226_v45  ;;  %v685_v28 = vsel %vm682_vm5, %v2226_v45, %v2227_v8 }
 0x2c4   :  { %751 = vmatpush.msra.mxu0 %v684_v29  ;;  %771 = vmatpush.msra.mxu1 %v685_v28  ;;  %v3495_v29 = vpop.permute.xlu0 %2269 }
 0x2c5   :  { %1881 = vmatmul.msk.f32.vlgmr.msra.gmra.mxu1 %vm364_vm6, %v3317_v52  ;;  %1879 = vmatmul.msk.f32.vlgmr.msra.gmra.mxu0 %vm364_vm6, %v3317_v52  ;;  %v2271_v44 = vunpack.i.l.bf16 %v3495_v29 }
 0x2c6   :  { %1886 = vmatpush.msk.msrb.mxu0 %vm263_vm0, %v3332_v26  ;;  %v3762_v26 = vld [vmem:[#allocation18_spill] sm:$0xff] }
 0x2c7   :  { %v1273_v47 = vsel %vm263_vm0, %v3762_v26, %v3761_v3 }
 0x2c8   :  { %v3419_v63 = vpop.permute.xlu1 %2234  ;;  %v2283_v27 = vpack.i.bf16 %v1274_v25, %v1273_v47  ;;  %v3506_v25 = vpop.f32.mrf.mxu3 }
 0x2c9   :  { %v2237_v33 = vunpack.i.h.bf16 %v3419_v63  ;;  %v2236_v30 = vunpack.i.l.bf16 %v3419_v63 }
 0x2cb   :  { %v1026_v41 = vsel %vm1024_vm7, %v2207_v34, %v2237_v33 }
 0x2cc   :  { %v1343_v47 = vpop.permute.xlu0 %1342 }
 0x2d0   :  { %v1266_v20 = vpop.permute.xlu1 %1265 }
 0x2d1   :  { %v1271_v17 = vsel %vm169_vm3, %v1266_v20, %v3312_v2  ;;  %v1270_v11 = vsel %vm169_vm3, %v1264_v24, %v1266_v20  ;;  %v963_v2 = vsel %vm263_vm0, %v2121_v50, %v2122_v19  ;;  %v3766_v19 = vld [vmem:[#allocation16_spill] sm:$0xff]  ;;  %v2241_v24 = vunpack.i.l.bf16 %v2240_v51 }
 0x2d2   :  { %1340 = vrot.lane.b32.xlu0 %v1271_v17, %s2509_s9  ;;  %1338 = vrot.lane.b32.xlu2 %v1270_v11, %s2509_s9  ;;  %v2278_v59 = vpack.i.bf16 %v963_v2, %v967_v1  ;;  %v1275_v21 = vsel %vm263_vm0, %v3766_v19, %v3765_v49  ;;  %v3767_v50 = vld [vmem:[#allocation24_spill] sm:$0xff]  ;;  %v3510_v1 = vperm.slane %v52_v9, 0  ;;  %v1446_v49 = vmul.f32 %v3512_v43, %v3506_v25 }
 0x2d3   :  { %v1280_v15 = vsel %vm263_vm0, %v3767_v50, %v1202_v38  ;;  %v1031_v31 = vsel %vm1024_vm7, %v2241_v24, %v2242_v18  ;;  %v2272_v19 = vunpack.i.h.bf16 %v3495_v29  ;;  %v2277_v50 = vunpack.i.h.bf16 %v2275_v42 }
 0x2d4   :  { %v2293_v56 = vpack.i.bf16 %v1280_v15, %v1275_v21  ;;  %v1445_v38 = vmul.f32 %v3510_v1, %v3504_v16 }
 0x2d6   :  { %v1453_v15 = vmul.f32 %v1445_v38, %v1445_v38 }
 0x2d8   :  { %v3443_v12 = vpop.permute.xlu1 %2244 }
 0x2d9   :  { %v2247_v40 = vunpack.i.h.bf16 %v3443_v12  ;;  %v2246_v58 = vunpack.i.l.bf16 %v3443_v12 }
 0x2da   :  { %2284 = vrot.lane.b32.xlu0 %v2283_v27, %s2509_s9  ;;  %2279 = vrot.lane.b32.xlu2 %v2278_v59, %s2508_s8  ;;  %v2266_v27 = vunpack.i.l.bf16 %v3485_v7 }
 0x2db   :  { %v1032_v6 = vsel %vm1024_vm7, %v2242_v18, %v2247_v40  ;;  %v1029_v37 = vsel %vm1024_vm7, %v2246_v58, %v2236_v30  ;;  %v1355_v18 = vsel %vm1344_vm8, %v2276_v39, %v2277_v50 }
 0x2e0   :  { %v2250_v14 = vpop.permute.xlu1 %2249 }
 0x2e1   :  { %v2252_v22 = vunpack.i.h.bf16 %v2250_v14  ;;  %v2251_v60 = vunpack.i.l.bf16 %v2250_v14  ;;  %v1454_v14 = vmul.f32 %v1446_v49, %v1446_v49 }
 0x2e2   :  { %2299 = vrot.lane.b32.xlu0 %v3770_v36, %s2508_s8  ;;  %2294 = vrot.lane.b32.xlu2 %v2293_v56, %s2509_s9  ;;  %v3523_v56 = vperm.slane %v52_v9, 2  ;;  %v1448_v36 = vadd.f32 %v1446_v49, %v1445_v38 }
 0x2e3   :  { %v1034_v61 = vsel %vm1024_vm7, %v2251_v60, %v2252_v22  ;;  %v1456_v34 = vadd.f32 %v1454_v14, %v1453_v15 }
 0x2e8   :  { %v2255_v57 = vpop.permute.xlu1 %2254 }
 0x2e9   :  { %v2256_v0 = vunpack.i.l.bf16 %v2255_v57  ;;  %v2257_v4 = vunpack.i.h.bf16 %v2255_v57  ;;  %v2267_v57 = vunpack.i.h.bf16 %v3485_v7  ;;  %v2261_v7 = vunpack.i.l.bf16 %v3489_v5 }
 0x2eb   :  { %v1035_v62 = vsel %vm1024_vm7, %v2252_v22, %v2256_v0  ;;  %v3532_v22 = vpop.f32.mrf.mxu3 }
 0x2ec   :  { %1090 = vmatpush.msra.mxu3 %v1035_v62  ;;  %v1461_v62 = vmul.f32 %v3510_v1, %v3532_v22 }
 0x2ee   :  { %1091 = vmatpush.msra.mxu3 %v1032_v6 }
 0x2f0   :  { %v1017_v46 = vpop.permute.xlu1 %1016  ;;  %1092 = vmatpush.msra.mxu3 %v1029_v37 }
 0x2f1   :  { %v1037_v13 = vsel %vm1024_vm7, %v1017_v46, %v3327_v54  ;;  %v1028_v54 = vsel %vm1024_vm7, %v2257_v4, %v2246_v58 }
 0x2f2   :  { %1882 = vmatpush.msk.msra.mxu2 %vm263_vm0, %v1037_v13  ;;  %1093 = vmatpush.msra.mxu3 %v1026_v41  ;;  %v2262_v13 = vunpack.i.h.bf16 %v3489_v5  ;;  %v1356_v41 = vsel %vm1344_vm8, %v2277_v50, %v2271_v44 }
 0x2f3   :  { %1885 = vmatmul.msk.f32.vlgmr.msra.gmra.mxu3 %vm364_vm6, %v3317_v52 }
 0x2f4   :  { %1070 = vmatpush.msra.mxu2 %v1034_v61 }
 0x2f6   :  { %1071 = vmatpush.msra.mxu2 %v1031_v31  ;;  %v1469_v31 = vmul.f32 %v1461_v62, %v1461_v62 }
 0x2f8   :  { %1072 = vmatpush.msra.mxu2 %v1028_v54  ;;  %v3487_v55 = vpop.permute.xlu1 %2289 }
 0x2f9   :  { %v2292_v48 = vunpack.i.h.bf16 %v3487_v55  ;;  %v2291_v32 = vunpack.i.l.bf16 %v3487_v55 }
 0x2fa   :  { %1073 = vmatpush.msra.mxu2 %v1025_v23 }
 0x2fb   :  { %1883 = vmatmul.msk.f32.vlgmr.msra.gmra.mxu2 %vm364_vm6, %v3317_v52  ;;  %v1354_v45 = vsel %vm1344_vm8, %v2292_v48, %v2276_v39  ;;  %v1352_v48 = vsel %vm1344_vm8, %v2266_v27, %v2267_v57  ;;  %v1349_v39 = vsel %vm1344_vm8, %v2272_v19, %v2261_v7  ;;  %v1350_v55 = vsel %vm1344_vm8, %v2261_v7, %v2291_v32 }
 0x300   :  { %v1337_v10 = vpop.permute.xlu1 %1336 }
 0x308   :  { %v3499_v26 = vpop.permute.xlu1 %2304 }
 0x309   :  { %v2306_v12 = vunpack.i.l.bf16 %v3499_v26  ;;  %v2307_v29 = vunpack.i.h.bf16 %v3499_v26 }
 0x30b   :  { %v1348_v35 = vsel %vm1344_vm8, %v2306_v12, %v2272_v19 }
 0x32c   :  { %v1339_v53 = vpop.permute.xlu2 %1338 }
 0x32d   :  { %v1357_v8 = vsel %vm1344_vm8, %v1337_v10, %v1339_v53  ;;  %v1353_v10 = vsel %vm1344_vm8, %v2267_v57, %v2262_v13 }
 0x32e   :  { %1888 = vmatpush.msk.msrb.mxu1 %vm263_vm0, %v1357_v8 }
 0x330   :  { %1390 = vmatpush.msrb.mxu1 %v1354_v45 }
 0x334   :  { %v2280_v28 = vpop.permute.xlu2 %2279 }
 0x335   :  { %v2282_v20 = vunpack.i.h.bf16 %v2280_v28  ;;  %v2281_v17 = vunpack.i.l.bf16 %v2280_v28 }
 0x337   :  { %v1036_v11 = vsel %vm1024_vm7, %v2256_v0, %v2281_v17  ;;  %v1033_v3 = vsel %vm1024_vm7, %v2247_v40, %v2282_v20  ;;  %v3530_v40 = vpop.f32.mrf.mxu2 }
 0x338   :  { %1110 = vmatpush.msrb.mxu0 %v1036_v11  ;;  %v1447_v58 = vmul.f32 %v3523_v56, %v3530_v40 }
 0x33a   :  { %1111 = vmatpush.msrb.mxu0 %v1033_v3  ;;  %v1449_v4 = vadd.f32 %v1448_v36, %v1447_v58  ;;  %v1455_v61 = vmul.f32 %v1447_v58, %v1447_v58 }
 0x33c   :  { %v3508_v2 = vpop.permute.xlu2 %2294  ;;  %v1457_v42 = vadd.f32 %v1456_v34, %v1455_v61  ;;  %1450 = vadd.xlane.f32.xlu2 %v1449_v4 }
 0x33d   :  { %v2297_v59 = vunpack.i.h.bf16 %v3508_v2  ;;  %v2296_v28 = vunpack.i.l.bf16 %v3508_v2 }
 0x33e   :  { %1458 = vadd.xlane.f32.xlu1 %v1457_v42 }
 0x33f   :  { %v1351_v21 = vsel %vm1344_vm8, %v2297_v59, %v2266_v27 }
 0x340   :  { %1391 = vmatpush.msrb.mxu1 %v1351_v21 }
 0x342   :  { %1392 = vmatpush.msrb.mxu1 %v1348_v35  ;;  %v3527_v51 = vpop.f32.mrf.mxu1  ;;  %v3539_v6 = vpop.f32.mrf.mxu0 }
 0x343   :  { %v1462_v46 = vmul.f32 %v3512_v43, %v3539_v6  ;;  %v1463_v24 = vmul.f32 %v3523_v56, %v3527_v51 }
 0x344   :  { %v1341_v0 = vpop.permute.xlu0 %1340 }
 0x345   :  { %v1358_v60 = vsel %vm1344_vm8, %v1339_v53, %v1341_v0  ;;  %v1359_v37 = vsel %vm1344_vm8, %v1341_v0, %v1343_v47  ;;  %v1470_v54 = vmul.f32 %v1462_v46, %v1462_v46  ;;  %v1464_v23 = vadd.f32 %v1462_v46, %v1461_v62 }
 0x346   :  { %1890 = vmatpush.msk.msrb.mxu2 %vm263_vm0, %v1358_v60  ;;  %1892 = vmatpush.msk.msrb.mxu3 %vm263_vm0, %v1359_v37  ;;  %v1471_v8 = vmul.f32 %v1463_v24, %v1463_v24  ;;  %vm1606_vm0 = vcmask 1031168  }
 0x347   :  { %v1465_v53 = vadd.f32 %v1464_v23, %v1463_v24  ;;  %v1472_v45 = vadd.f32 %v1470_v54, %v1469_v31  ;;  %v2510_v23 = vmov 0  }
 0x348   :  { %1410 = vmatpush.msrb.mxu2 %v1355_v18  ;;  %1430 = vmatpush.msrb.mxu3 %v1356_v41 }
 0x349   :  { %1466 = vadd.xlane.f32.xlu0 %v1465_v53  ;;  %v1473_v9 = vadd.f32 %v1472_v45, %v1471_v8  ;;  %2308 = vset.pattern.permute.xlu1 %v2510_v23 }
 0x34a   :  { %1411 = vmatpush.msrb.mxu2 %v1352_v48  ;;  %1431 = vmatpush.msrb.mxu3 %v1353_v10 }
 0x34b   :  { %1474 = vadd.xlane.f32.xlu2 %v1473_v9 }
 0x34c   :  { %v2285_v5 = vpop.permute.xlu0 %2284  ;;  %1412 = vmatpush.msrb.mxu2 %v1349_v39  ;;  %1432 = vmatpush.msrb.mxu3 %v1350_v55 }
 0x34d   :  { %v2287_v20 = vunpack.i.h.bf16 %v2285_v5  ;;  %v2286_v17 = vunpack.i.l.bf16 %v2285_v5 }
 0x34f   :  { %v1345_v11 = vsel %vm1344_vm8, %v2307_v29, %v2286_v17  ;;  %v1346_v3 = vsel %vm1344_vm8, %v2286_v17, %v2287_v20  ;;  %v1347_v47 = vsel %vm1344_vm8, %v2287_v20, %v2296_v28 }
 0x350   :  { %1393 = vmatpush.msrb.mxu1 %v1345_v11  ;;  %1413 = vmatpush.msrb.mxu2 %v1346_v3 }
 0x351   :  { %1433 = vmatpush.msrb.mxu3 %v1347_v47  ;;  %1891 = vmatmul.msk.f32.vlgmr.msrb.gmra.mxu2 %vm364_vm6, %v3317_v52 }
 0x352   :  { %1893 = vmatmul.msk.f32.vlgmr.msrb.gmra.mxu3 %vm364_vm6, %v3317_v52  ;;  %1889 = vmatmul.msk.f32.vlgmr.msrb.gmra.mxu1 %vm364_vm6, %v3317_v52 }
 0x354   :  { %v2300_v26 = vpop.permute.xlu0 %2299 }
 0x355   :  { %v2302_v2 = vunpack.i.h.bf16 %v2300_v26  ;;  %v2301_v27 = vunpack.i.l.bf16 %v2300_v26 }
 0x357   :  { %v1030_v12 = vsel %vm1024_vm7, %v2236_v30, %v2301_v27  ;;  %v1027_v59 = vsel %vm1024_vm7, %v2237_v33, %v2302_v2  ;;  %v3603_v2 = vld [vmem:[%s3704_s3] sm:$0xff]  ;;  %s2513_s3 = smov 107  }
 0x358   :  { %1112 = vmatpush.msrb.mxu0 %v1030_v12 }
 0x35a   :  { %1113 = vmatpush.msrb.mxu0 %v1027_v59 }
 0x35b   :  { %1887 = vmatmul.msk.f32.vlgmr.msrb.gmra.mxu0 %vm364_vm6, %v3317_v52 }
 0x376   :  { %v3578_v49 = vpop.f32.mrf.mxu3 }
 0x377   :  { %v1478_v30 = vmul.f32 %v3512_v43, %v3578_v49 }
 0x379   :  { %v1486_v35 = vmul.f32 %v1478_v30, %v1478_v30 }
 0x37e   :  { %v3576_v38 = vpop.f32.mrf.mxu2 }
 0x37f   :  { %v1477_v21 = vmul.f32 %v3510_v1, %v3576_v38 }
 0x381   :  { %v1485_v14 = vmul.f32 %v1477_v21, %v1477_v21  ;;  %v1480_v57 = vadd.f32 %v1478_v30, %v1477_v21  ;;  %v2512_v30 = vmov 1  }
 0x382   :  { %2309 = vset.pattern.permute.xlu2 %v2512_v30 }
 0x383   :  { %v1488_v37 = vadd.f32 %v1486_v35, %v1485_v14 }
 0x3af   :  { %v1451_v4 = vpop.xlane.xlu2 %1450 }
 0x3b1   :  { %v1459_v61 = vpop.xlane.xlu1 %1458 }
 0x3bc   :  { %v1467_v31 = vpop.xlane.xlu0 %1466 }
 0x3bd   :  { %v1468_v54 = vadd.f32 %v1467_v31, %v1451_v4 }
 0x3be   :  { %v1475_v32 = vpop.xlane.xlu2 %1474 }
 0x3bf   :  { %v1476_v39 = vadd.f32 %v1475_v32, %v1459_v61 }
 0x3cf   :  { %v3580_v19 = vpop.f32.mrf.mxu1 }
 0x3d0   :  { %v1493_v63 = vmul.f32 %v3510_v1, %v3580_v19 }
 0x3d2   :  { %v1501_v18 = vmul.f32 %v1493_v63, %v1493_v63 }
 0x3d4   :  { %v3588_v33 = vpop.f32.mrf.mxu2 }
 0x3d5   :  { %v1494_v52 = vmul.f32 %v3512_v43, %v3588_v33  ;;  %v3592_v50 = vpop.f32.mrf.mxu3 }
 0x3d6   :  { %v1495_v15 = vmul.f32 %v3523_v56, %v3592_v50 }
 0x3d7   :  { %v1496_v44 = vadd.f32 %v1494_v52, %v1493_v63  ;;  %v1502_v58 = vmul.f32 %v1494_v52, %v1494_v52 }
 0x3d8   :  { %v3596_v36 = vpop.f32.mrf.mxu0  ;;  %v1503_v46 = vmul.f32 %v1495_v15, %v1495_v15 }
 0x3d9   :  { %v1479_v0 = vmul.f32 %v3523_v56, %v3596_v36  ;;  %v1497_v62 = vadd.f32 %v1496_v44, %v1495_v15  ;;  %v1504_v13 = vadd.f32 %v1502_v58, %v1501_v18 }
 0x3db   :  { %v1481_v34 = vadd.f32 %v1480_v57, %v1479_v0  ;;  %v1487_v60 = vmul.f32 %v1479_v0, %v1479_v0  ;;  %1498 = vadd.xlane.f32.xlu1 %v1497_v62  ;;  %v1505_v41 = vadd.f32 %v1504_v13, %v1503_v46 }
 0x3dd   :  { %1482 = vadd.xlane.f32.xlu2 %v1481_v34  ;;  %v1489_v24 = vadd.f32 %v1488_v37, %v1487_v60 }
 0x3df   :  { %1490 = vadd.xlane.f32.xlu0 %v1489_v24 }
 0x3e5   :  { %1506 = vadd.xlane.f32.xlu2 %v1505_v41 }
 0x44e   :  { %v1499_v42 = vpop.xlane.xlu1 %1498 }
 0x450   :  { %v1483_v7 = vpop.xlane.xlu2 %1482 }
 0x451   :  { %v1484_v48 = vadd.f32 %v1483_v7, %v1468_v54 }
 0x452   :  { %v1491_v53 = vpop.xlane.xlu0 %1490 }
 0x453   :  { %v1500_v10 = vadd.f32 %v1499_v42, %v1484_v48  ;;  %v1492_v55 = vadd.f32 %v1491_v53, %v1476_v39 }
 0x455   :  { %v1509_v8 = vmul.f32 0.001953125, %v1500_v10 }
 0x457   :  { %v1511_v29 = vmul.f32 %v1509_v8, %v1509_v8 }
 0x458   :  { %v1507_v45 = vpop.xlane.xlu2 %1506 }
 0x459   :  { %v1508_v5 = vadd.f32 %v1507_v45, %v1492_v55 }
 0x45b   :  { %v1510_v28 = vmul.f32 0.001953125, %v1508_v5 }
 0x45d   :  { %v1512_v20 = vsub.f32 %v1510_v28, %v1511_v29 }
 0x45f   :  { %v1513_v17 = vadd.f32 1e-05, %v1512_v20 }
 0x461   :  { %2417 = vrsqrt.f32 %v1513_v17  ;;  %vm1520_vm10 = vweird.f32 %v1513_v17 }
 0x467   :  { %v2418_v11 = vpop.eup %2417 }
 0x468   :  { %v1515_v3 = vmul.f32 %v2418_v11, %v1513_v17  ;;  %vm1521_vm9 = vweird.f32 %v2418_v11 }
 0x469   :  { %vm1522_vm11 = vmor %vm1520_vm10, %vm1521_vm9 }
 0x46a   :  { %v1516_v47 = vmul.f32 %v2418_v11, %v1515_v3 }
 0x46c   :  { %v1517_v9 = vmul.f32 0.5, %v1516_v47 }
 0x46e   :  { %v1518_v26 = vsub.f32 1.5, %v1517_v9 }
 0x470   :  { %v1519_v27 = vmul.f32 %v2418_v11, %v1518_v26 }
 0x472   :  { %v1523_v12 = vsel %vm1522_vm11, %v2418_v11, %v1519_v27 }
 0x473   :  { %v1524_v59 = vmul.f32 %v1523_v12, %v3603_v2 }
 0x475   :  { %1533 = vperm.xlu1 %2308, %v1524_v59   ;;  %v1525_v21 = vmul.f32 %v1524_v59, %v1509_v8 }
 0x477   :  { %1527 = vrot.lane.b32.xlu0 %v1525_v21, %s2511_s14 }
 0x4e7   :  { %v1534_v15 = vpop.permute.xlu1 %1533 }
 0x4e8   :  { %v1536_v14 = vmul.f32 %v1534_v15, %v3504_v16  ;;  %v1537_v35 = vmul.f32 %v1534_v15, %v3506_v25  ;;  %v1538_v44 = vmul.f32 %v1534_v15, %v3530_v40  ;;  %v1550_v57 = vmul.f32 %v1534_v15, %v3532_v22 }
 0x4e9   :  { %v1528_v63 = vpop.permute.xlu0 %1527  ;;  %v1551_v0 = vmul.f32 %v1534_v15, %v3539_v6  ;;  %v1552_v18 = vmul.f32 %v1534_v15, %v3527_v51  ;;  %v1559_v58 = vmul.f32 %v1534_v15, %v3576_v38  ;;  %v1560_v62 = vmul.f32 %v1534_v15, %v3578_v49 }
 0x4ea   :  { %v1530_v52 = vsub.f32 %v3603_v2, %v1528_v63  ;;  %v1561_v34 = vmul.f32 %v1534_v15, %v3596_v36  ;;  %v1568_v60 = vmul.f32 %v1534_v15, %v3580_v19  ;;  %v1569_v16 = vmul.f32 %v1534_v15, %v3588_v33 }
 0x4eb   :  { %v1570_v25 = vmul.f32 %v1534_v15, %v3592_v50 }
 0x4ec   :  { %1541 = vperm.xlu2 %2309, %v1530_v52  }
 0x546   :  { %v1542_v37 = vpop.permute.xlu2 %1541 }
 0x547   :  { %v1544_v40 = vadd.f32 %v1542_v37, %v1536_v14  ;;  %v1545_v46 = vadd.f32 %v1542_v37, %v1537_v35  ;;  %v1546_v22 = vadd.f32 %v1542_v37, %v1538_v44  ;;  %v1553_v24 = vadd.f32 %v1550_v57, %v1542_v37 }
 0x548   :  { %v1554_v6 = vadd.f32 %v1551_v0, %v1542_v37  ;;  %v1555_v13 = vadd.f32 %v1552_v18, %v1542_v37  ;;  %v1562_v51 = vadd.f32 %v1559_v58, %v1542_v37  ;;  %v1563_v41 = vadd.f32 %v1560_v62, %v1542_v37 }
 0x549   :  { %v1547_v38 = vmax.f32 %v1544_v40, 0.0  ;;  %v1548_v4 = vmax.f32 %v1545_v46, 0.0  ;;  %v1549_v49 = vmax.f32 %v1546_v22, 0.0  ;;  %v1556_v61 = vmax.f32 %v1553_v24, 0.0 }
 0x54a   :  { %v1557_v36 = vmax.f32 %v1554_v6, 0.0  ;;  %v1558_v32 = vmax.f32 %v1555_v13, 0.0  ;;  %v1564_v19 = vadd.f32 %v1561_v34, %v1542_v37  ;;  %v1565_v31 = vmax.f32 %v1562_v51, 0.0 }
 0x54b   :  { %v1566_v33 = vmax.f32 %v1563_v41, 0.0  ;;  %v1571_v54 = vadd.f32 %v1568_v60, %v1542_v37  ;;  %v1572_v50 = vadd.f32 %v1569_v16, %v1542_v37  ;;  %v1573_v23 = vadd.f32 %v1570_v25, %v1542_v37 }
 0x54c   :  { %v1567_v7 = vmax.f32 %v1564_v19, 0.0  ;;  %v1577_v42 = vmax.f32 %v1547_v38, %v1556_v61  ;;  %v1578_v48 = vmax.f32 %v1548_v4, %v1557_v36  ;;  %v1579_v55 = vmax.f32 %v1549_v49, %v1558_v32 }
 0x54d   :  { %v1574_v10 = vmax.f32 %v1571_v54, 0.0  ;;  %v1575_v53 = vmax.f32 %v1572_v50, 0.0  ;;  %v1576_v39 = vmax.f32 %v1573_v23, 0.0 }
 0x54f   :  { %v1580_v8 = vmax.f32 %v1565_v31, %v1574_v10  ;;  %v1581_v45 = vmax.f32 %v1566_v33, %v1575_v53  ;;  %v1582_v5 = vmax.f32 %v1567_v7, %v1576_v39 }
 0x551   :  { %v1583_v29 = vmax.f32 %v1577_v42, %v1580_v8  ;;  %v1584_v28 = vmax.f32 %v1578_v48, %v1581_v45  ;;  %v1585_v20 = vmax.f32 %v1579_v55, %v1582_v5 }
 0x553   :  { %v3620_v17 = vmul.f32 %v1585_v20, %v3523_v56  ;;  %v1586_v11 = vmul.f32 %v1583_v29, %v3510_v1  ;;  %v1587_v3 = vmul.f32 %v1584_v28, %v3512_v43 }
 0x555   :  { %1647 = vrot.lane.b32.xlu2 %v3620_v17, %s2513_s3  ;;  %1656 = vrot.lane.b32.xlu1 %v3620_v17, %s2514_s15  ;;  %v3626_v47 = vpack.i.bf16 %v1587_v3, %v1586_v11 }
 0x557   :  { %2311 = vrot.lane.b32.xlu0 %v3626_v47, %s2514_s15 }
 0x55d   :  { %2326 = vrot.lane.b32.xlu2 %v3626_v47, %s2515_s16  ;;  %2321 = vrot.lane.b32.xlu1 %v3626_v47, %s2516_s17 }
 0x55f   :  { %2316 = vrot.lane.b32.xlu0 %v3626_v47, %s2513_s3 }
 0x565   :  { %1621 = vrot.lane.b32.xlu2 %v3620_v17, %s2505_s30  ;;  %1629 = vrot.lane.b32.xlu1 %v3620_v17, %s2515_s16 }
 0x567   :  { %1638 = vrot.lane.b32.xlu0 %v3620_v17, %s2516_s17 }
 0x56d   :  { %2341 = vrot.lane.b32.xlu2 %v3626_v47, %s2517_s18  ;;  %2336 = vrot.lane.b32.xlu1 %v3626_v47, %s2504_s2 }
 0x56f   :  { %2331 = vrot.lane.b32.xlu0 %v3626_v47, %s2505_s30 }
 0x575   :  { %1596 = vrot.lane.b32.xlu2 %v3620_v17, %s2503_s0  ;;  %1604 = vrot.lane.b32.xlu1 %v3620_v17, %s2517_s18 }
 0x577   :  { %1613 = vrot.lane.b32.xlu0 %v3620_v17, %s2504_s2 }
 0x57f   :  { %2346 = vrot.lane.b32.xlu0 %v3626_v47, %s2503_s0 }
 0x5af   :  { %v1648_v9 = vpop.permute.xlu2 %1647 }
 0x5b7   :  { %v2327_v15 = vpop.permute.xlu2 %2326 }
 0x5b8   :  { %v2329_v16 = vunpack.i.h.bf16 %v2327_v15  ;;  %v2328_v25 = vunpack.i.l.bf16 %v2327_v15 }
 0x5ba   :  { %v1632_v13 = vsel %vm1631_vm15, %v2328_v25, %v2329_v16 }
 0x5bf   :  { %v1622_v24 = vpop.permute.xlu2 %1621 }
 0x5c7   :  { %v1657_v26 = vpop.permute.xlu1 %1656  ;;  %v2342_v54 = vpop.permute.xlu2 %2341 }
 0x5c8   :  { %v2344_v42 = vunpack.i.h.bf16 %v2342_v54  ;;  %v2343_v48 = vunpack.i.l.bf16 %v2342_v54 }
 0x5c9   :  { %v2312_v27 = vpop.permute.xlu0 %2311 }
 0x5ca   :  { %v2314_v12 = vunpack.i.h.bf16 %v2312_v27  ;;  %v2313_v59 = vunpack.i.l.bf16 %v2312_v27  ;;  %v1607_v8 = vsel %vm1606_vm0, %v2343_v48, %v2344_v42 }
 0x5cc   :  { %v1659_v21 = vsel %vm1658_vm12, %v2313_v59, %v2314_v12  ;;  %v1660_v30 = vsel %vm1658_vm12, %v2314_v12, %v1657_v26 }
 0x5cd   :  { %v2350_v63 = vpack.i.bf16 %v1660_v30, %v1659_v21 }
 0x5cf   :  { %v2322_v52 = vpop.permute.xlu1 %2321  ;;  %2351 = vrot.lane.b32.xlu1 %v2350_v63, %s2507_s7  ;;  %v1597_v20 = vpop.permute.xlu2 %1596 }
 0x5d0   :  { %v2324_v62 = vunpack.i.h.bf16 %v2322_v52  ;;  %v2323_v34 = vunpack.i.l.bf16 %v2322_v52 }
 0x5d1   :  { %v2317_v14 = vpop.permute.xlu0 %2316 }
 0x5d2   :  { %v2319_v35 = vunpack.i.h.bf16 %v2317_v14  ;;  %v2318_v44 = vunpack.i.l.bf16 %v2317_v14  ;;  %v1641_v46 = vsel %vm1640_vm14, %v2323_v34, %v2324_v62 }
 0x5d4   :  { %v1651_v57 = vsel %vm1649_vm13, %v2319_v35, %v1648_v9  ;;  %v1650_v0 = vsel %vm1649_vm13, %v2318_v44, %v2319_v35 }
 0x5d5   :  { %v2360_v18 = vpack.i.bf16 %v1648_v9, %v1651_v57  ;;  %v2355_v58 = vpack.i.bf16 %v1650_v0, %v1657_v26 }
 0x5d7   :  { %v1630_v60 = vpop.permute.xlu1 %1629  ;;  %2361 = vrot.lane.b32.xlu2 %v2360_v18, %s2507_s7  ;;  %2356 = vrot.lane.b32.xlu0 %v2355_v58, %s2507_s7 }
 0x5d8   :  { %v1633_v40 = vsel %vm1631_vm15, %v2329_v16, %v1630_v60 }
 0x5d9   :  { %v1639_v37 = vpop.permute.xlu0 %1638  ;;  %v2375_v51 = vpack.i.bf16 %v1630_v60, %v1633_v40 }
 0x5da   :  { %v1642_v22 = vsel %vm1640_vm14, %v2324_v62, %v1639_v37  ;;  %v2370_v41 = vpack.i.bf16 %v1632_v13, %v1639_v37 }
 0x5db   :  { %v2365_v6 = vpack.i.bf16 %v1642_v22, %v1641_v46 }
 0x5dd   :  { %2366 = vrot.lane.b32.xlu1 %v2365_v6, %s2507_s7 }
 0x5df   :  { %v2337_v38 = vpop.permute.xlu1 %2336  ;;  %2376 = vrot.lane.b32.xlu2 %v2375_v51, %s2507_s7  ;;  %2371 = vrot.lane.b32.xlu0 %v2370_v41, %s2507_s7 }
 0x5e0   :  { %v2339_v4 = vunpack.i.h.bf16 %v2337_v38  ;;  %v2338_v49 = vunpack.i.l.bf16 %v2337_v38 }
 0x5e1   :  { %v2332_v61 = vpop.permute.xlu0 %2331 }
 0x5e2   :  { %v2334_v36 = vunpack.i.h.bf16 %v2332_v61  ;;  %v2333_v32 = vunpack.i.l.bf16 %v2332_v61  ;;  %v1615_v19 = vsel %vm144_vm2, %v2338_v49, %v2339_v4 }
 0x5e3   :  { %v2385_v50 = vpack.i.bf16 %v1615_v19, %v1622_v24 }
 0x5e4   :  { %v1623_v31 = vsel %vm169_vm3, %v2333_v32, %v2334_v36  ;;  %v1624_v33 = vsel %vm169_vm3, %v2334_v36, %v1622_v24 }
 0x5e5   :  { %v2380_v23 = vpack.i.bf16 %v1624_v33, %v1623_v31 }
 0x5e7   :  { %v1605_v7 = vpop.permute.xlu1 %1604  ;;  %2386 = vrot.lane.b32.xlu0 %v2385_v50, %s2507_s7  ;;  %2381 = vrot.lane.b32.xlu1 %v2380_v23, %s2507_s7 }
 0x5e8   :  { %v1608_v53 = vsel %vm1606_vm0, %v2344_v42, %v1605_v7 }
 0x5e9   :  { %v1614_v10 = vpop.permute.xlu0 %1613  ;;  %v2395_v45 = vpack.i.bf16 %v1608_v53, %v1607_v8 }
 0x5ea   :  { %v1616_v39 = vsel %vm144_vm2, %v2339_v4, %v1614_v10 }
 0x5eb   :  { %v2390_v55 = vpack.i.bf16 %v1614_v10, %v1616_v39 }
 0x5ed   :  { %2391 = vrot.lane.b32.xlu2 %v2390_v55, %s2507_s7 }
 0x5ef   :  { %2396 = vrot.lane.b32.xlu1 %v2395_v45, %s2507_s7  ;;  %v1661_v45 = vld [vmem:[#allocation5] sm:$0xff] }
 0x5f1   :  { %v2347_v5 = vpop.permute.xlu0 %2346 }
 0x5f2   :  { %v2349_v29 = vunpack.i.h.bf16 %v2347_v5  ;;  %v2348_v28 = vunpack.i.l.bf16 %v2347_v5 }
 0x5f4   :  { %v1599_v11 = vsel %vm96_vm1, %v2349_v29, %v1597_v20  ;;  %v1598_v3 = vsel %vm96_vm1, %v2348_v28, %v2349_v29  ;;  %vm1752_vm1 = vcmask 588800  }
 0x5f5   :  { %v2405_v9 = vpack.i.bf16 %v1597_v20, %v1599_v11  ;;  %v2400_v26 = vpack.i.bf16 %v1598_v3, %v1605_v7 }
 0x5f7   :  { %2406 = vrot.lane.b32.xlu2 %v2405_v9, %s2507_s7  ;;  %2401 = vrot.lane.b32.xlu0 %v2400_v26, %s2507_s7 }
 0x5f8   :  { %2411 = vrot.lane.b32.xlu1 %v3626_v47, %s2507_s7 }
 0x5ff   :  { %1666 = vrot.lane.b32.xlu0 %v3620_v17, %s2507_s7  ;;  %1796 = vrot.lane.b32.xlu2 %v3510_v1, %s2509_s9 }
 0x600   :  { %1798 = vrot.lane.b32.xlu1 %v3512_v43, %s2509_s9 }
 0x607   :  { %1800 = vrot.lane.b32.xlu0 %v3523_v56, %s2509_s9 }
 0x631   :  { %v2362_v21 = vpop.permute.xlu2 %2361 }
 0x632   :  { %v2364_v63 = vunpack.i.h.bf16 %v2362_v21  ;;  %v2363_v52 = vunpack.i.l.bf16 %v2362_v21 }
 0x634   :  { %v1731_v56 = vsel %vm336_vm4, %v2363_v52, %v2364_v63 }
 0x639   :  { %v2377_v43 = vpop.permute.xlu2 %2376 }
 0x63a   :  { %v2379_v18 = vunpack.i.h.bf16 %v2377_v43  ;;  %v2378_v58 = vunpack.i.l.bf16 %v2377_v43 }
 0x63c   :  { %v1727_v40 = vsel %vm336_vm4, %v2378_v58, %v2379_v18 }
 0x641   :  { %v2352_v27 = vpop.permute.xlu1 %2351 }
 0x642   :  { %v2354_v12 = vunpack.i.h.bf16 %v2352_v27  ;;  %v2353_v59 = vunpack.i.l.bf16 %v2352_v27 }
 0x644   :  { %v1732_v30 = vsel %vm336_vm4, %v2353_v59, %v2354_v12 }
 0x645   :  { %1763 = vmatpush.msra.mxu0 %v1732_v30 }
 0x647   :  { %v2392_v37 = vpop.permute.xlu2 %2391 }
 0x648   :  { %v2394_v46 = vunpack.i.h.bf16 %v2392_v37  ;;  %v2393_v22 = vunpack.i.l.bf16 %v2392_v37  ;;  %v2519_v37 = vmov 3  }
 0x649   :  { %v2357_v47 = vpop.permute.xlu0 %2356 }
 0x64a   :  { %v2359_v17 = vunpack.i.h.bf16 %v2357_v47  ;;  %v2358_v15 = vunpack.i.l.bf16 %v2357_v47  ;;  %v1723_v36 = vsel %vm336_vm4, %v2393_v22, %v2394_v46 }
 0x64c   :  { %v1730_v1 = vsel %vm336_vm4, %v2359_v17, %v2363_v52  ;;  %v1733_v14 = vsel %vm336_vm4, %v2354_v12, %v2358_v15  ;;  %v2518_v15 = vmov 2  }
 0x64d   :  { %1764 = vmatpush.msra.mxu0 %v1730_v1  ;;  %1783 = vmatpush.msra.mxu1 %v1733_v14 }
 0x64e   :  { %2415 = vset.pattern.permute.xlu0 %v2518_v15 }
 0x64f   :  { %v2367_v35 = vpop.permute.xlu1 %2366  ;;  %1784 = vmatpush.msra.mxu1 %v1731_v56 }
 0x650   :  { %v2369_v44 = vunpack.i.h.bf16 %v2367_v35  ;;  %v2368_v57 = vunpack.i.l.bf16 %v2367_v35 }
 0x651   :  { %v2372_v0 = vpop.permute.xlu0 %2371  ;;  %v2407_v54 = vpop.permute.xlu2 %2406 }
 0x652   :  { %v2374_v62 = vunpack.i.h.bf16 %v2372_v0  ;;  %v2373_v34 = vunpack.i.l.bf16 %v2372_v0  ;;  %v1728_v60 = vsel %vm336_vm4, %v2368_v57, %v2369_v44  ;;  %v2409_v23 = vunpack.i.h.bf16 %v2407_v54 }
 0x653   :  { %1765 = vmatpush.msra.mxu0 %v1728_v60  ;;  %v2408_v7 = vunpack.i.l.bf16 %v2407_v54 }
 0x654   :  { %v1726_v16 = vsel %vm336_vm4, %v2374_v62, %v2378_v58  ;;  %v1729_v25 = vsel %vm336_vm4, %v2369_v44, %v2373_v34 }
 0x655   :  { %1785 = vmatpush.msra.mxu1 %v1729_v25  ;;  %1766 = vmatpush.msra.mxu0 %v1726_v16  ;;  %v1719_v29 = vsel %vm336_vm4, %v2408_v7, %v2409_v23 }
 0x657   :  { %1786 = vmatpush.msra.mxu1 %v1727_v40 }
 0x659   :  { %v2387_v24 = vpop.permute.xlu0 %2386  ;;  %v2382_v6 = vpop.permute.xlu1 %2381 }
 0x65a   :  { %v2389_v13 = vunpack.i.h.bf16 %v2387_v24  ;;  %v2388_v51 = vunpack.i.l.bf16 %v2387_v24  ;;  %v2384_v41 = vunpack.i.h.bf16 %v2382_v6  ;;  %v2383_v38 = vunpack.i.l.bf16 %v2382_v6  ;;  %v1797_v11 = vpop.permute.xlu2 %1796 }
 0x65c   :  { %v1724_v4 = vsel %vm336_vm4, %v2383_v38, %v2384_v41  ;;  %v1725_v49 = vsel %vm336_vm4, %v2384_v41, %v2388_v51  ;;  %v1722_v61 = vsel %vm336_vm4, %v2389_v13, %v2393_v22 }
 0x65d   :  { %1767 = vmatpush.msra.mxu0 %v1724_v4  ;;  %1787 = vmatpush.msra.mxu1 %v1725_v49 }
 0x65f   :  { %1768 = vmatpush.msra.mxu0 %v1722_v61  ;;  %1788 = vmatpush.msra.mxu1 %v1723_v36 }
 0x661   :  { %v2397_v32 = vpop.permute.xlu1 %2396 }
 0x662   :  { %v2399_v19 = vunpack.i.h.bf16 %v2397_v32  ;;  %v2398_v31 = vunpack.i.l.bf16 %v2397_v32 }
 0x664   :  { %v1720_v33 = vsel %vm336_vm4, %v2398_v31, %v2399_v19 }
 0x665   :  { %1769 = vmatpush.msra.mxu0 %v1720_v33 }
 0x669   :  { %v2402_v50 = vpop.permute.xlu0 %2401 }
 0x66a   :  { %v2404_v42 = vunpack.i.h.bf16 %v2402_v50  ;;  %v2403_v48 = vunpack.i.l.bf16 %v2402_v50  ;;  %v2412_v10 = vpop.permute.xlu1 %2411 }
 0x66b   :  { %v2414_v53 = vunpack.i.h.bf16 %v2412_v10  ;;  %v2413_v39 = vunpack.i.l.bf16 %v2412_v10 }
 0x66c   :  { %v1718_v55 = vsel %vm336_vm4, %v2404_v42, %v2408_v7  ;;  %v1721_v8 = vsel %vm336_vm4, %v2399_v19, %v2403_v48 }
 0x66d   :  { %1770 = vmatpush.msra.mxu0 %v1718_v55  ;;  %1789 = vmatpush.msra.mxu1 %v1721_v8  ;;  %v1716_v5 = vsel %vm336_vm4, %v2413_v39, %v2414_v53 }
 0x66f   :  { %1771 = vmatpush.msra.mxu0 %v1716_v5  ;;  %1790 = vmatpush.msra.mxu1 %v1719_v29 }
 0x670   :  { %1894 = vmatmul.msk.f32.vlgmr.msra.gmra.mxu0 %vm1752_vm1, %v1661_v45 }
 0x671   :  { %v1667_v28 = vpop.permute.xlu0 %1666 }
 0x672   :  { %v1717_v20 = vsel %vm336_vm4, %v2414_v53, %v1667_v28  ;;  %v1799_v3 = vpop.permute.xlu1 %1798 }
 0x673   :  { %1791 = vmatpush.msra.mxu1 %v1717_v20  ;;  %v1802_v9 = vsel %vm1344_vm8, %v1797_v11, %v1799_v3 }
 0x674   :  { %1895 = vmatmul.msk.f32.vlgmr.msra.gmra.mxu1 %vm1752_vm1, %v1661_v45 }
 0x679   :  { %v1801_v26 = vpop.permute.xlu0 %1800 }
 0x67a   :  { %v1803_v59 = vsel %vm1344_vm8, %v1799_v3, %v1801_v26 }
 0x6ed   :  { %v1773_v27 = vpop.f32.mrf.mxu0 }
 0x6ee   :  { %v1806_v12 = vmul.f32 %v1802_v9, %v1773_v27 }
 0x6f0   :  { %v1812_v30 = vmul.f32 %v1806_v12, %v1806_v12 }
 0x6f1   :  { %v1793_v21 = vpop.f32.mrf.mxu1 }
 0x6f2   :  { %v1807_v47 = vmul.f32 %v1803_v59, %v1793_v21 }
 0x6f4   :  { %v1808_v63 = vadd.f32 %v1807_v47, %v1806_v12  ;;  %v1813_v52 = vmul.f32 %v1807_v47, %v1807_v47 }
 0x6f6   :  { %1809 = vadd.xlane.f32.xlu2 %v1808_v63  ;;  %v1814_v17 = vadd.f32 %v1813_v52, %v1812_v30 }
 0x6f8   :  { %1815 = vadd.xlane.f32.xlu1 %v1814_v17 }
 0x769   :  { %v1810_v1 = vpop.xlane.xlu2 %1809 }
 0x76a   :  { %v1811_v14 = vmul.f32 0.0078125, %v1810_v1 }
 0x76b   :  { %v1816_v43 = vpop.xlane.xlu1 %1815 }
 0x76c   :  { %v1817_v56 = vmul.f32 0.0078125, %v1816_v43  ;;  %v1818_v35 = vmul.f32 %v1811_v14, %v1811_v14  ;;  %v1832_v46 = vsub.f32 %v1773_v27, %v1811_v14  ;;  %v1833_v22 = vsub.f32 %v1793_v21, %v1811_v14 }
 0x76e   :  { %v1819_v44 = vsub.f32 %v1817_v56, %v1818_v35 }
 0x770   :  { %v1820_v57 = vadd.f32 1e-05, %v1819_v44 }
 0x772   :  { %2419 = vrsqrt.f32 %v1820_v57  ;;  %vm1827_vm3 = vweird.f32 %v1820_v57 }
 0x778   :  { %v2420_v0 = vpop.eup %2419 }
 0x779   :  { %v1822_v18 = vmul.f32 %v2420_v0, %v1820_v57  ;;  %vm1828_vm2 = vweird.f32 %v2420_v0 }
 0x77a   :  { %vm1829_vm4 = vmor %vm1827_vm3, %vm1828_vm2 }
 0x77b   :  { %v1823_v58 = vmul.f32 %v2420_v0, %v1822_v18 }
 0x77d   :  { %v1824_v62 = vmul.f32 0.5, %v1823_v58 }
 0x77f   :  { %v1825_v34 = vsub.f32 1.5, %v1824_v62 }
 0x781   :  { %v1826_v60 = vmul.f32 %v2420_v0, %v1825_v34 }
 0x783   :  { %v1830_v16 = vsel %vm1829_vm4, %v2420_v0, %v1826_v60 }
 0x784   :  { %v1831_v25 = vmul.f32 %v1830_v16, %v3603_v2 }
 0x786   :  { %1836 = vperm.xlu0 %2415, %v1831_v25  }
 0x78e   :  { %2416 = vset.pattern.permute.xlu0 %v2519_v37 }
 0x78f   :  { %1843 = vperm.xlu0 %2416, %v3603_v2  }
 0x7f8   :  { %v1837_v40 = vpop.permute.xlu0 %1836 }
 0x7f9   :  { %v1839_v24 = vmul.f32 %v1837_v40, %v1832_v46  ;;  %v1840_v6 = vmul.f32 %v1837_v40, %v1833_v22 }
 0x801   :  { %v1844_v13 = vpop.permute.xlu0 %1843 }
 0x802   :  { %v1846_v51 = vadd.f32 %v1844_v13, %v1839_v24  ;;  %v1847_v41 = vadd.f32 %v1844_v13, %v1840_v6 }
 0x804   :  { %v1848_v38 = vmax.f32 %v1846_v51, 0.0  ;;  %v1849_v4 = vmax.f32 %v1847_v41, 0.0 }
 0x806   :  { %1850 = vst [vmem:[#allocation7] sm:$0xff] %v1848_v38 }
 0x807   :  { %1851 = vst [vmem:[#allocation7 + $0x8] sm:$0xff] %v1849_v4 }
 0x808   :  { %1862 = dma.vmem_to_hbm [thread:$0]  %s1858_s20, 256, %s1860_s23, [#allocation4]  }
 0x809   :  { %2497 = dma.done.wait [#allocation4], 256  }
 0x80a   :  { %2498 = vsyncadd [#allocation4], 4294967040 }
 0x80b   :  { %1867 = vsyncpa [#allocation3], 1 }
 0x80c   :  { %1868 = vsyncpa [#allocation6], 1 }
 0x80d   :  { %1869 = vsyncpa [#allocation4], 1 }

</bundles_post_ra>
